<compile_context>
chip_gen: v7x
topology: tpu7x:2x2x1
jax: 0.10.0
libtpu: 0.0.40
codegen_flags: <defaults>
</compile_context>

<pallas_src>
import functools

import numpy as np
import jax
import jax.numpy as jnp
from jax.experimental import pallas as pl
from jax.experimental.pallas import tpu as pltpu


# ----------------------------------------------------------------------------
# Anchor utilities (plain numpy, identical semantics to the reference module)
# ----------------------------------------------------------------------------
def generate_anchor_base(base_size=16, ratios=(0.5, 1, 2), anchor_scales=(8, 16, 32)):
    py = base_size / 2.0
    px = base_size / 2.0
    anchor_base = np.zeros((len(ratios) * len(anchor_scales), 4), dtype=np.float32)
    for i in range(len(ratios)):
        for j in range(len(anchor_scales)):
            h = base_size * anchor_scales[j] * np.sqrt(ratios[i])
            w = base_size * anchor_scales[j] * np.sqrt(1.0 / ratios[i])
            index = i * len(anchor_scales) + j
            anchor_base[index, 0] = py - h / 2.0
            anchor_base[index, 1] = px - w / 2.0
            anchor_base[index, 2] = py + h / 2.0
            anchor_base[index, 3] = px + w / 2.0
    return anchor_base


def _enumerate_shifted_anchor(anchor_base, feat_stride, height, width):
    shift_y = np.arange(0, height * feat_stride, feat_stride)
    shift_x = np.arange(0, width * feat_stride, feat_stride)
    shift_x, shift_y = np.meshgrid(shift_x, shift_y)
    shift = np.stack((shift_y.ravel(), shift_x.ravel(),
                      shift_y.ravel(), shift_x.ravel()), axis=1)
    A = anchor_base.shape[0]
    K = shift.shape[0]
    anchor = anchor_base.reshape((1, A, 4)) + shift.reshape((1, K, 4)).transpose((1, 0, 2))
    anchor = anchor.reshape((K * A, 4)).astype(np.float32)
    return anchor


def _round_up(x, m):
    return ((x + m - 1) // m) * m


# ----------------------------------------------------------------------------
# Pallas kernel: in-kernel 3x3 conv (9 matmuls) + relu + fused heads + fg prob
# ----------------------------------------------------------------------------
def _rpn_head_kernel(x_ref, wconv_ref, bconv_ref, wheads_ref, bheads_ref,
                     out_ref, *, W, A):
    """One (batch, row-tile) grid step.

    x_ref     : (tile_h+2, W+2, C)  padded haloed input window (bf16)
    wconv_ref : (9, C, M)           3x3 conv taps, tap index = ky*3 + kx (bf16)
    bconv_ref : (1, M)              f32
    wheads_ref: (M, n_pad)          fused [w_loc | w_score | w_fg | 0-pad] (bf16)
    bheads_ref: (1, n_pad)          f32
    out_ref   : (tile_h*W, n_pad)   f32 fused, lane-dense output slab
    """
    tile_hp, _, C = x_ref.shape
    tile_h = tile_hp - 2
    M = wconv_ref.shape[2]
    rows = tile_h * W

    x = x_ref[...]                                             # (tile_h+2, W+2, C)

    # 3x3 conv as 9 accumulated matmuls: bf16 MXU operands, f32 accumulator.
    # kx outer -> only 3 sublane-shifting column slices; ky row slices are on
    # the untiled leading dim and are free.
    acc = jnp.zeros((rows, M), jnp.float32)
    for kx in range(3):
        xs = x[:, kx:kx + W, :]                                # (tile_h+2, W, C)
        for ky in range(3):
            patch = xs[ky:ky + tile_h].reshape(rows, C)
            acc = acc + jnp.dot(patch, wconv_ref[ky * 3 + kx],
                                preferred_element_type=jnp.float32)

    h = jnp.maximum(acc + bconv_ref[...], 0.0)                 # relu, f32

    # Fused heads: one (rows, M) @ (M, n_pad) matmul (loc | score | fg | pad).
    heads = jnp.dot(h.astype(wheads_ref.dtype), wheads_ref[...],
                    preferred_element_type=jnp.float32) + bheads_ref[...]

    # Foreground prob for columns [6A, 7A): softmax over 2 classes ==
    # sigmoid(s1 - s0).  Numerically-stable tanh form (EUP slot) + column
    # mask so no lane slicing / concat is needed.  Padded columns stay 0.
    col = jax.lax.broadcasted_iota(jnp.int32, heads.shape, 1)
    fg = 0.5 * (jnp.tanh(0.5 * heads) + 1.0)
    is_fg = jnp.logical_and(col >= 6 * A, col < 7 * A)
    out_ref[...] = jnp.where(is_fg, fg, heads)


def _pick_tile_h(H, W, max_rows):
    """Largest divisor of H such that (tile_h * W) <= max_rows and is a
    multiple of 8 (sublane alignment of the output block).  Falls back to the
    whole height (single tile, full-dim block exemption applies)."""
    if H * W <= max_rows:
        return H
    best = None
    for th in range(1, H + 1):
        if H % th != 0:
            continue
        if th * W <= max_rows and (th * W) % 8 == 0:
            best = th
    return best if best is not None else H


def rpn_level_forward(x_nchw, w_conv9, b_conv, w_heads_pad, b_heads_pad, A,
                      compute_dtype=jnp.bfloat16, max_tile_rows=1024):
    """Runs the fused RPN head on one feature level.

    x_nchw     : (N, C, H, W) float32 (PyTorch layout)
    w_conv9    : (9, C, M) conv taps; w_heads_pad: (M, n_pad); b_*: f32 biases
    Returns the fused output slab (N, H*W, n_pad) float32 with columns
    [loc (4A) | score (2A) | fg (A) | zero-pad].
    """
    N, C, H, W = x_nchw.shape
    M = w_conv9.shape[-1]
    HW = H * W
    n_pad = w_heads_pad.shape[-1]

    # Layout plumbing: NCHW -> NHWC (bf16), pad height/width by 1.
    x_nhwc = jnp.transpose(x_nchw, (0, 2, 3, 1)).astype(compute_dtype)
    x_pad = jnp.pad(x_nhwc, ((0, 0), (1, 1), (1, 1), (0, 0)))  # (N, H+2, W+2, C)

    tile_h = _pick_tile_h(H, W, max_tile_rows)
    n_tiles = H // tile_h
    tile_rows = tile_h * W

    if n_tiles == 1:
        # Whole image per step: no overlapping windows, free reshape.
        x_tiles = x_pad.reshape(N, 1, H + 2, W + 2, C)
    else:
        # Overlapping row windows carrying a 1-row halo on each side.
        x_tiles = jnp.stack(
            [jax.lax.slice_in_dim(x_pad, j * tile_h, j * tile_h + tile_h + 2, axis=1)
             for j in range(n_tiles)], axis=1)   # (N, n_tiles, tile_h+2, W+2, C)

    itm = jnp.dtype(compute_dtype).itemsize
    w_conv_c = w_conv9.astype(compute_dtype)
    w_heads_c = w_heads_pad.astype(compute_dtype)
    b_conv2 = b_conv.reshape(1, M).astype(jnp.float32)
    b_heads2 = b_heads_pad.reshape(1, n_pad).astype(jnp.float32)

    # Scoped-VMEM budget: double-buffered input/output/weights + in-kernel
    # f32 intermediates (acc, h, heads) + relayout headroom.
    est = (2 * (tile_h + 2) * (W + 2) * C * itm                 # input, 2 bufs
           + 2 * tile_rows * n_pad * 4                          # output, 2 bufs
           + 2 * (9 * C * M * itm + M * 4                       # conv w + bias
                  + M * n_pad * itm + n_pad * 4)                # head w + bias
           + 2 * tile_rows * M * 4                              # acc + relu
           + tile_rows * n_pad * 4                              # heads
           + 4 * (tile_h + 2) * (W + 2) * C * itm)              # patch temporaries
    vmem_limit = int(min(64 << 20, max(32 << 20, 2 * est)))

    grid_spec = pltpu.PrefetchScalarGridSpec(
        num_scalar_prefetch=0,
        grid=(N, n_tiles),
        in_specs=[
            pl.BlockSpec((None, None, tile_h + 2, W + 2, C),
                         lambda i, j: (i, j, 0, 0, 0)),
            pl.BlockSpec((9, C, M), lambda i, j: (0, 0, 0)),
            pl.BlockSpec((1, M), lambda i, j: (0, 0)),
            pl.BlockSpec((M, n_pad), lambda i, j: (0, 0)),
            pl.BlockSpec((1, n_pad), lambda i, j: (0, 0)),
        ],
        out_specs=pl.BlockSpec((None, tile_rows, n_pad), lambda i, j: (i, j, 0)),
    )

    kernel = functools.partial(_rpn_head_kernel, W=W, A=A)
    out = pl.pallas_call(
        kernel,
        out_shape=jax.ShapeDtypeStruct((N, HW, n_pad), jnp.float32),
        grid_spec=grid_spec,
        compiler_params=pltpu.CompilerParams(
            dimension_semantics=("parallel", "parallel"),
            vmem_limit_bytes=vmem_limit),
    )(x_tiles, w_conv_c, b_conv2, w_heads_c, b_heads2)
    return out


# ----------------------------------------------------------------------------
# Module wrapper mirroring RegionProposalNetwork.forward
# ----------------------------------------------------------------------------
class RegionProposalNetworkPallas:
    def __init__(self, in_channels, mid_channels, ratios, anchor_scales,
                 feat_stride, key, compute_dtype=jnp.bfloat16, max_tile_rows=1024):
        self.anchor_base = [generate_anchor_base(ratios=ratios, anchor_scales=s)
                            for s in anchor_scales]
        self.feat_stride = feat_stride
        self.n_anchor = self.anchor_base[0].shape[0]
        self.compute_dtype = compute_dtype
        self.max_tile_rows = max_tile_rows
        A = self.n_anchor
        k1, k2, k3 = jax.random.split(key, 3)
        # normal_init(mean=0, std=0.01), zero biases -- deterministic from key
        self.w_conv = 0.01 * jax.random.normal(
            k1, (3, 3, in_channels, mid_channels), dtype=jnp.float32)
        self.b_conv = jnp.zeros((mid_channels,), jnp.float32)
        self.w_score = 0.01 * jax.random.normal(k2, (mid_channels, A * 2),
                                                dtype=jnp.float32)
        self.b_score = jnp.zeros((A * 2,), jnp.float32)
        self.w_loc = 0.01 * jax.random.normal(k3, (mid_channels, A * 4),
                                              dtype=jnp.float32)
        self.b_loc = jnp.zeros((A * 4,), jnp.float32)

        # Fused head weights: fold the 2-class softmax pairing into the score
        # head (fg logit = s1 - s0), concatenate loc / score / fg columns, and
        # zero-pad to a multiple of 128 for lane-dense output stores.
        w_fg = self.w_score[:, 1::2] - self.w_score[:, 0::2]       # (M, A)
        b_fg = self.b_score[1::2] - self.b_score[0::2]             # (A,)
        n_head = 7 * A
        self.n_head_pad = _round_up(n_head, 128)
        pad = self.n_head_pad - n_head
        self.w_heads = jnp.concatenate(
            [self.w_loc, self.w_score, w_fg,
             jnp.zeros((mid_channels, pad), jnp.float32)], axis=1)
        self.b_heads = jnp.concatenate(
            [self.b_loc, self.b_score, b_fg, jnp.zeros((pad,), jnp.float32)])
        self.w_conv9 = self.w_conv.reshape(9, in_channels, mid_channels)

    def __call__(self, features, img_size, scale=1.0):
        A = self.n_anchor
        anchors, locs, scores, fgs = [], [], [], []
        for i, x in enumerate(features):
            n, _, hh, ww = x.shape
            anchor = _enumerate_shifted_anchor(np.array(self.anchor_base[i]),
                                               self.feat_stride[i], hh, ww)
            out = rpn_level_forward(x, self.w_conv9, self.b_conv,
                                    self.w_heads, self.b_heads, A,
                                    compute_dtype=self.compute_dtype,
                                    max_tile_rows=self.max_tile_rows)
            # fused slab columns: [loc (4A) | score (2A) | fg (A) | pad]
            locs.append(out[:, :, :4 * A].reshape(n, hh * ww * A, 4))
            scores.append(out[:, :, 4 * A:6 * A].reshape(n, hh * ww * A, 2))
            fgs.append(out[:, :, 6 * A:7 * A].reshape(n, hh * ww * A))
            anchors.append(anchor)
        anchors_all = np.concatenate(anchors)
        rpn_locs_all = jnp.concatenate(locs, axis=1)
        rpn_scores_all = jnp.concatenate(scores, axis=1)
        rpn_fg_scores_all = jnp.concatenate(fgs, axis=1)
        # TODO(synk): ProposalCreator (per-image bbox decode + NMS -> rois /
        # roi_indices) is not defined in the provided source and has no clean
        # Pallas equivalent; it is omitted here.
        return rpn_locs_all, rpn_scores_all, rpn_fg_scores_all, anchors_all


# ----------------------------------------------------------------------------
# Pure-JAX reference (mirrors the bf16 cast points, independent head math)
# ----------------------------------------------------------------------------
def _reference_level(x_nchw, rpn, A):
    cd = rpn.compute_dtype
    M = rpn.w_conv.shape[-1]
    x = jnp.transpose(x_nchw, (0, 2, 3, 1)).astype(cd)
    xp = jnp.pad(x, ((0, 0), (1, 1), (1, 1), (0, 0)))
    N, Hp, Wp, _ = xp.shape
    H, W = Hp - 2, Wp - 2
    wc = rpn.w_conv.astype(cd)
    h = jnp.zeros((N, H, W, M), jnp.float32)
    for ky in range(3):
        for kx in range(3):
            h = h + jax.lax.dot_general(
                xp[:, ky:ky + H, kx:kx + W, :], wc[ky, kx],
                dimension_numbers=(((3,), (0,)), ((), ())),
                preferred_element_type=jnp.float32)
    h = jnp.maximum(h + rpn.b_conv, 0.0)
    hc = h.astype(cd)
    loc = jax.lax.dot_general(hc, rpn.w_loc.astype(cd),
                              dimension_numbers=(((3,), (0,)), ((), ())),
                              preferred_element_type=jnp.float32) + rpn.b_loc
    score = jax.lax.dot_general(hc, rpn.w_score.astype(cd),
                                dimension_numbers=(((3,), (0,)), ((), ())),
                                preferred_element_type=jnp.float32) + rpn.b_score
    score5 = score.reshape(N, H, W, A, 2)
    fg = jax.nn.softmax(score5, axis=4)[..., 1].reshape(N, -1)
    return (loc.reshape(N, H * W * A, 4),
            score.reshape(N, H * W * A, 2), fg)


def reference_forward(rpn, features):
    A = rpn.n_anchor
    locs, scores, fgs = [], [], []
    for x in features:
        l, s, f = _reference_level(x, rpn, A)
        locs.append(l); scores.append(s); fgs.append(f)
    return (jnp.concatenate(locs, axis=1),
            jnp.concatenate(scores, axis=1),
            jnp.concatenate(fgs, axis=1))


# ----------------------------------------------------------------------------
if __name__ == "__main__":
    key = jax.random.PRNGKey(0)
    kf1, kf2, kparam = jax.random.split(key, 3)

    in_channels, mid_channels = 4, 32
    ratios = [0.5, 1.0, 2.0]
    anchor_scales = [[8], [16]]        # one scale per feature level
    feat_stride = [16, 32]

    # max_tile_rows=128 so the 16x16 level is split into 2 row-tiles (haloed
    # multi-tile path) while the 8x8 level takes the single-tile path.
    rpn = RegionProposalNetworkPallas(in_channels, mid_channels, ratios,
                                      anchor_scales, feat_stride, kparam,
                                      compute_dtype=jnp.bfloat16,
                                      max_tile_rows=128)

    # two small feature levels, PyTorch NCHW layout, batch=2
    features = [
        jax.random.normal(kf1, (2, in_channels, 16, 16), dtype=jnp.float32),
        jax.random.normal(kf2, (2, in_channels, 8, 8), dtype=jnp.float32),
    ]
    img_size = (256, 256)

    rpn_locs, rpn_scores, rpn_fg_scores, anchors = rpn(features, img_size, scale=1.0)
    jax.block_until_ready((rpn_locs, rpn_scores, rpn_fg_scores))

    # sanity check against the pure-JAX reference
    ref_locs, ref_scores, ref_fg = reference_forward(rpn, features)
    np.testing.assert_allclose(np.asarray(rpn_locs), np.asarray(ref_locs),
                               rtol=1e-2, atol=2e-4)
    np.testing.assert_allclose(np.asarray(rpn_scores), np.asarray(ref_scores),
                               rtol=1e-2, atol=2e-4)
    np.testing.assert_allclose(np.asarray(rpn_fg_scores), np.asarray(ref_fg),
                               rtol=1e-2, atol=2e-4)
    assert anchors.shape == (16 * 16 * 3 + 8 * 8 * 3, 4)
    assert rpn_locs.shape == (2, 16 * 16 * 3 + 8 * 8 * 3, 4)
    assert rpn_scores.shape == (2, 16 * 16 * 3 + 8 * 8 * 3, 2)
    assert rpn_fg_scores.shape == (2, 16 * 16 * 3 + 8 * 8 * 3)

    print("KERNEL_OK")
</pallas_src>

<mosaic_0001>
module attributes {stable_mosaic.version = 11 : i64} {
  func.func @_rpn_head_kernel(%arg0: i32, %arg1: i32, %arg2: memref<1x1x10x18x4xbf16, #tpu.memory_space<vmem>>, %arg3: memref<9x4x32xbf16, #tpu.memory_space<vmem>>, %arg4: memref<1x32xf32, #tpu.memory_space<vmem>>, %arg5: memref<32x128xbf16, #tpu.memory_space<vmem>>, %arg6: memref<1x128xf32, #tpu.memory_space<vmem>>, %arg7: memref<1x128x128xf32, #tpu.memory_space<vmem>>) attributes {dimension_semantics = [#tpu.dimension_semantics<parallel>, #tpu.dimension_semantics<parallel>], iteration_bounds = array<i64: 2, 2>, scalar_prefetch = 0 : i64, scratch_operands = 0 : i64, tpu.core_type = #tpu.core_type<tc>, window_params = [{transform_indices = @transform_0, window_bounds = array<i64: 1, 1, 10, 18, 4>}, {pipeline_mode = #tpu.pipeline_mode<synchronous>, transform_indices = @transform_1, window_bounds = array<i64: 9, 4, 32>}, {pipeline_mode = #tpu.pipeline_mode<synchronous>, transform_indices = @transform_2, window_bounds = array<i64: 1, 32>}, {pipeline_mode = #tpu.pipeline_mode<synchronous>, transform_indices = @transform_3, window_bounds = array<i64: 32, 128>}, {pipeline_mode = #tpu.pipeline_mode<synchronous>, transform_indices = @transform_4, window_bounds = array<i64: 1, 128>}, {transform_indices = @transform_5, window_bounds = array<i64: 1, 128, 128>}]} {
    %c0 = arith.constant 0 : index
    %c0_0 = arith.constant 0 : index
    %c0_1 = arith.constant 0 : index
    %c0_2 = arith.constant 0 : index
    %c0_3 = arith.constant 0 : index
    %0 = vector.load %arg2[%c0, %c0_0, %c0_1, %c0_2, %c0_3] : memref<1x1x10x18x4xbf16, #tpu.memory_space<vmem>>, vector<1x1x10x18x4xbf16>
    %1 = vector.shape_cast %0 : vector<1x1x10x18x4xbf16> to vector<10x18x4xbf16>
    %cst = arith.constant 0.000000e+00 : f32
    %2 = vector.broadcast %cst : f32 to vector<128x32xf32>
    %3 = vector.extract_strided_slice %1 {offsets = [0, 0, 0], sizes = [10, 16, 4], strides = [1, 1, 1]} : vector<10x18x4xbf16> to vector<10x16x4xbf16>
    %4 = vector.extract_strided_slice %3 {offsets = [0, 0, 0], sizes = [8, 16, 4], strides = [1, 1, 1]} : vector<10x16x4xbf16> to vector<8x16x4xbf16>
    %5 = vector.shape_cast %4 : vector<8x16x4xbf16> to vector<128x4xbf16>
    %c0_4 = arith.constant 0 : index
    %c0_5 = arith.constant 0 : index
    %c0_6 = arith.constant 0 : index
    %6 = vector.load %arg3[%c0_4, %c0_5, %c0_6] : memref<9x4x32xbf16, #tpu.memory_space<vmem>>, vector<1x4x32xbf16>
    %7 = vector.shape_cast %6 : vector<1x4x32xbf16> to vector<4x32xbf16>
    %cst_7 = arith.constant dense<0.000000e+00> : vector<128x32xf32>
    %8 = tpu.matmul %5, %7, %cst_7 {dimension_numbers = #tpu.dot_dimension_numbers<[1], [0], [0], [1], [0, 0, 1, 1], [], []>} : vector<128x4xbf16>, vector<4x32xbf16>, vector<128x32xf32> -> vector<128x32xf32>
    %9 = arith.addf %2, %8 : vector<128x32xf32>
    %10 = vector.extract_strided_slice %3 {offsets = [1, 0, 0], sizes = [8, 16, 4], strides = [1, 1, 1]} : vector<10x16x4xbf16> to vector<8x16x4xbf16>
    %11 = vector.shape_cast %10 : vector<8x16x4xbf16> to vector<128x4xbf16>
    %c3 = arith.constant 3 : index
    %c0_8 = arith.constant 0 : index
    %c0_9 = arith.constant 0 : index
    %12 = vector.load %arg3[%c3, %c0_8, %c0_9] : memref<9x4x32xbf16, #tpu.memory_space<vmem>>, vector<1x4x32xbf16>
    %13 = vector.shape_cast %12 : vector<1x4x32xbf16> to vector<4x32xbf16>
    %cst_10 = arith.constant dense<0.000000e+00> : vector<128x32xf32>
    %14 = tpu.matmul %11, %13, %cst_10 {dimension_numbers = #tpu.dot_dimension_numbers<[1], [0], [0], [1], [0, 0, 1, 1], [], []>} : vector<128x4xbf16>, vector<4x32xbf16>, vector<128x32xf32> -> vector<128x32xf32>
    %15 = arith.addf %9, %14 : vector<128x32xf32>
    %16 = vector.extract_strided_slice %3 {offsets = [2, 0, 0], sizes = [8, 16, 4], strides = [1, 1, 1]} : vector<10x16x4xbf16> to vector<8x16x4xbf16>
    %17 = vector.shape_cast %16 : vector<8x16x4xbf16> to vector<128x4xbf16>
    %c6 = arith.constant 6 : index
    %c0_11 = arith.constant 0 : index
    %c0_12 = arith.constant 0 : index
    %18 = vector.load %arg3[%c6, %c0_11, %c0_12] : memref<9x4x32xbf16, #tpu.memory_space<vmem>>, vector<1x4x32xbf16>
    %19 = vector.shape_cast %18 : vector<1x4x32xbf16> to vector<4x32xbf16>
    %cst_13 = arith.constant dense<0.000000e+00> : vector<128x32xf32>
    %20 = tpu.matmul %17, %19, %cst_13 {dimension_numbers = #tpu.dot_dimension_numbers<[1], [0], [0], [1], [0, 0, 1, 1], [], []>} : vector<128x4xbf16>, vector<4x32xbf16>, vector<128x32xf32> -> vector<128x32xf32>
    %21 = arith.addf %15, %20 : vector<128x32xf32>
    %22 = vector.extract_strided_slice %1 {offsets = [0, 1, 0], sizes = [10, 16, 4], strides = [1, 1, 1]} : vector<10x18x4xbf16> to vector<10x16x4xbf16>
    %23 = vector.extract_strided_slice %22 {offsets = [0, 0, 0], sizes = [8, 16, 4], strides = [1, 1, 1]} : vector<10x16x4xbf16> to vector<8x16x4xbf16>
    %24 = vector.shape_cast %23 : vector<8x16x4xbf16> to vector<128x4xbf16>
    %c1 = arith.constant 1 : index
    %c0_14 = arith.constant 0 : index
    %c0_15 = arith.constant 0 : index
    %25 = vector.load %arg3[%c1, %c0_14, %c0_15] : memref<9x4x32xbf16, #tpu.memory_space<vmem>>, vector<1x4x32xbf16>
    %26 = vector.shape_cast %25 : vector<1x4x32xbf16> to vector<4x32xbf16>
    %cst_16 = arith.constant dense<0.000000e+00> : vector<128x32xf32>
    %27 = tpu.matmul %24, %26, %cst_16 {dimension_numbers = #tpu.dot_dimension_numbers<[1], [0], [0], [1], [0, 0, 1, 1], [], []>} : vector<128x4xbf16>, vector<4x32xbf16>, vector<128x32xf32> -> vector<128x32xf32>
    %28 = arith.addf %21, %27 : vector<128x32xf32>
    %29 = vector.extract_strided_slice %22 {offsets = [1, 0, 0], sizes = [8, 16, 4], strides = [1, 1, 1]} : vector<10x16x4xbf16> to vector<8x16x4xbf16>
    %30 = vector.shape_cast %29 : vector<8x16x4xbf16> to vector<128x4xbf16>
    %c4 = arith.constant 4 : index
    %c0_17 = arith.constant 0 : index
    %c0_18 = arith.constant 0 : index
    %31 = vector.load %arg3[%c4, %c0_17, %c0_18] : memref<9x4x32xbf16, #tpu.memory_space<vmem>>, vector<1x4x32xbf16>
    %32 = vector.shape_cast %31 : vector<1x4x32xbf16> to vector<4x32xbf16>
    %cst_19 = arith.constant dense<0.000000e+00> : vector<128x32xf32>
    %33 = tpu.matmul %30, %32, %cst_19 {dimension_numbers = #tpu.dot_dimension_numbers<[1], [0], [0], [1], [0, 0, 1, 1], [], []>} : vector<128x4xbf16>, vector<4x32xbf16>, vector<128x32xf32> -> vector<128x32xf32>
    %34 = arith.addf %28, %33 : vector<128x32xf32>
    %35 = vector.extract_strided_slice %22 {offsets = [2, 0, 0], sizes = [8, 16, 4], strides = [1, 1, 1]} : vector<10x16x4xbf16> to vector<8x16x4xbf16>
    %36 = vector.shape_cast %35 : vector<8x16x4xbf16> to vector<128x4xbf16>
    %c7 = arith.constant 7 : index
    %c0_20 = arith.constant 0 : index
    %c0_21 = arith.constant 0 : index
    %37 = vector.load %arg3[%c7, %c0_20, %c0_21] : memref<9x4x32xbf16, #tpu.memory_space<vmem>>, vector<1x4x32xbf16>
    %38 = vector.shape_cast %37 : vector<1x4x32xbf16> to vector<4x32xbf16>
    %cst_22 = arith.constant dense<0.000000e+00> : vector<128x32xf32>
    %39 = tpu.matmul %36, %38, %cst_22 {dimension_numbers = #tpu.dot_dimension_numbers<[1], [0], [0], [1], [0, 0, 1, 1], [], []>} : vector<128x4xbf16>, vector<4x32xbf16>, vector<128x32xf32> -> vector<128x32xf32>
    %40 = arith.addf %34, %39 : vector<128x32xf32>
    %41 = vector.extract_strided_slice %1 {offsets = [0, 2, 0], sizes = [10, 16, 4], strides = [1, 1, 1]} : vector<10x18x4xbf16> to vector<10x16x4xbf16>
    %42 = vector.extract_strided_slice %41 {offsets = [0, 0, 0], sizes = [8, 16, 4], strides = [1, 1, 1]} : vector<10x16x4xbf16> to vector<8x16x4xbf16>
    %43 = vector.shape_cast %42 : vector<8x16x4xbf16> to vector<128x4xbf16>
    %c2 = arith.constant 2 : index
    %c0_23 = arith.constant 0 : index
    %c0_24 = arith.constant 0 : index
    %44 = vector.load %arg3[%c2, %c0_23, %c0_24] : memref<9x4x32xbf16, #tpu.memory_space<vmem>>, vector<1x4x32xbf16>
    %45 = vector.shape_cast %44 : vector<1x4x32xbf16> to vector<4x32xbf16>
    %cst_25 = arith.constant dense<0.000000e+00> : vector<128x32xf32>
    %46 = tpu.matmul %43, %45, %cst_25 {dimension_numbers = #tpu.dot_dimension_numbers<[1], [0], [0], [1], [0, 0, 1, 1], [], []>} : vector<128x4xbf16>, vector<4x32xbf16>, vector<128x32xf32> -> vector<128x32xf32>
    %47 = arith.addf %40, %46 : vector<128x32xf32>
    %48 = vector.extract_strided_slice %41 {offsets = [1, 0, 0], sizes = [8, 16, 4], strides = [1, 1, 1]} : vector<10x16x4xbf16> to vector<8x16x4xbf16>
    %49 = vector.shape_cast %48 : vector<8x16x4xbf16> to vector<128x4xbf16>
    %c5 = arith.constant 5 : index
    %c0_26 = arith.constant 0 : index
    %c0_27 = arith.constant 0 : index
    %50 = vector.load %arg3[%c5, %c0_26, %c0_27] : memref<9x4x32xbf16, #tpu.memory_space<vmem>>, vector<1x4x32xbf16>
    %51 = vector.shape_cast %50 : vector<1x4x32xbf16> to vector<4x32xbf16>
    %cst_28 = arith.constant dense<0.000000e+00> : vector<128x32xf32>
    %52 = tpu.matmul %49, %51, %cst_28 {dimension_numbers = #tpu.dot_dimension_numbers<[1], [0], [0], [1], [0, 0, 1, 1], [], []>} : vector<128x4xbf16>, vector<4x32xbf16>, vector<128x32xf32> -> vector<128x32xf32>
    %53 = arith.addf %47, %52 : vector<128x32xf32>
    %54 = vector.extract_strided_slice %41 {offsets = [2, 0, 0], sizes = [8, 16, 4], strides = [1, 1, 1]} : vector<10x16x4xbf16> to vector<8x16x4xbf16>
    %55 = vector.shape_cast %54 : vector<8x16x4xbf16> to vector<128x4xbf16>
    %c8 = arith.constant 8 : index
    %c0_29 = arith.constant 0 : index
    %c0_30 = arith.constant 0 : index
    %56 = vector.load %arg3[%c8, %c0_29, %c0_30] : memref<9x4x32xbf16, #tpu.memory_space<vmem>>, vector<1x4x32xbf16>
    %57 = vector.shape_cast %56 : vector<1x4x32xbf16> to vector<4x32xbf16>
    %cst_31 = arith.constant dense<0.000000e+00> : vector<128x32xf32>
    %58 = tpu.matmul %55, %57, %cst_31 {dimension_numbers = #tpu.dot_dimension_numbers<[1], [0], [0], [1], [0, 0, 1, 1], [], []>} : vector<128x4xbf16>, vector<4x32xbf16>, vector<128x32xf32> -> vector<128x32xf32>
    %59 = arith.addf %53, %58 : vector<128x32xf32>
    %c0_32 = arith.constant 0 : index
    %c0_33 = arith.constant 0 : index
    %60 = vector.load %arg4[%c0_32, %c0_33] : memref<1x32xf32, #tpu.memory_space<vmem>>, vector<1x32xf32>
    %61 = vector.broadcast %60 : vector<1x32xf32> to vector<128x32xf32>
    %62 = arith.addf %59, %61 : vector<128x32xf32>
    %cst_34 = arith.constant 0.000000e+00 : f32
    %63 = vector.broadcast %cst_34 : f32 to vector<128x32xf32>
    %64 = arith.maximumf %62, %63 : vector<128x32xf32>
    %65 = arith.truncf %64 : vector<128x32xf32> to vector<128x32xbf16>
    %c0_35 = arith.constant 0 : index
    %c0_36 = arith.constant 0 : index
    %66 = vector.load %arg5[%c0_35, %c0_36] : memref<32x128xbf16, #tpu.memory_space<vmem>>, vector<32x128xbf16>
    %cst_37 = arith.constant dense<0.000000e+00> : vector<128x128xf32>
    %67 = tpu.matmul %65, %66, %cst_37 {dimension_numbers = #tpu.dot_dimension_numbers<[1], [0], [0], [1], [0, 0, 1, 1], [], []>} : vector<128x32xbf16>, vector<32x128xbf16>, vector<128x128xf32> -> vector<128x128xf32>
    %c0_38 = arith.constant 0 : index
    %c0_39 = arith.constant 0 : index
    %68 = vector.load %arg6[%c0_38, %c0_39] : memref<1x128xf32, #tpu.memory_space<vmem>>, vector<1x128xf32>
    %69 = vector.broadcast %68 : vector<1x128xf32> to vector<128x128xf32>
    %70 = arith.addf %67, %69 : vector<128x128xf32>
    %71 = tpu.iota {dimensions = array<i32: 1>} : vector<128x128xi32>
    %cst_40 = arith.constant 5.000000e-01 : f32
    %72 = vector.broadcast %cst_40 : f32 to vector<128x128xf32>
    %73 = arith.mulf %72, %70 : vector<128x128xf32>
    %74 = math.tanh %73 : vector<128x128xf32>
    %cst_41 = arith.constant 1.000000e+00 : f32
    %75 = vector.broadcast %cst_41 : f32 to vector<128x128xf32>
    %76 = arith.addf %74, %75 : vector<128x128xf32>
    %cst_42 = arith.constant 5.000000e-01 : f32
    %77 = vector.broadcast %cst_42 : f32 to vector<128x128xf32>
    %78 = arith.mulf %77, %76 : vector<128x128xf32>
    %c18_i32 = arith.constant 18 : i32
    %79 = vector.broadcast %c18_i32 : i32 to vector<128x128xi32>
    %80 = arith.cmpi sge, %71, %79 : vector<128x128xi32>
    %c21_i32 = arith.constant 21 : i32
    %81 = vector.broadcast %c21_i32 : i32 to vector<128x128xi32>
    %82 = arith.cmpi slt, %71, %81 : vector<128x128xi32>
    %83 = arith.andi %80, %82 : vector<128x128xi1>
    %84 = arith.select %83, %78, %70 : vector<128x128xi1>, vector<128x128xf32>
    %c0_43 = arith.constant 0 : index
    %c0_44 = arith.constant 0 : index
    %c0_45 = arith.constant 0 : index
    %85 = vector.load %arg7[%c0_43, %c0_44, %c0_45] : memref<1x128x128xf32, #tpu.memory_space<vmem>>, vector<1x128x128xf32>
    %86 = vector.shape_cast %85 : vector<1x128x128xf32> to vector<128x128xf32>
    %87 = vector.shape_cast %84 : vector<128x128xf32> to vector<1x128x128xf32>
    tpu.vector_store %arg7[%c0_43, %c0_44, %c0_45], %87 {strides = array<i32>} : memref<1x128x128xf32, #tpu.memory_space<vmem>>, vector<1x128x128xf32>,
    return
  }
  func.func @transform_0(%arg0: i32, %arg1: i32) -> (i32, i32, i32, i32, i32) {
    %c0_i32 = arith.constant 0 : i32
    %c0_i32_0 = arith.constant 0 : i32
    %c0_i32_1 = arith.constant 0 : i32
    %c0_i32_2 = arith.constant 0 : i32
    return %arg0, %arg1, %c0_i32, %c0_i32_0, %c0_i32_1 : i32, i32, i32, i32, i32
  }
  func.func @transform_1(%arg0: i32, %arg1: i32) -> (i32, i32, i32) {
    %c0_i32 = arith.constant 0 : i32
    %c0_i32_0 = arith.constant 0 : i32
    %c0_i32_1 = arith.constant 0 : i32
    %c0_i32_2 = arith.constant 0 : i32
    return %c0_i32, %c0_i32_0, %c0_i32_1 : i32, i32, i32
  }
  func.func @transform_2(%arg0: i32, %arg1: i32) -> (i32, i32) {
    %c0_i32 = arith.constant 0 : i32
    %c0_i32_0 = arith.constant 0 : i32
    %c0_i32_1 = arith.constant 0 : i32
    return %c0_i32, %c0_i32_0 : i32, i32
  }
  func.func @transform_3(%arg0: i32, %arg1: i32) -> (i32, i32) {
    %c0_i32 = arith.constant 0 : i32
    %c0_i32_0 = arith.constant 0 : i32
    %c0_i32_1 = arith.constant 0 : i32
    return %c0_i32, %c0_i32_0 : i32, i32
  }
  func.func @transform_4(%arg0: i32, %arg1: i32) -> (i32, i32) {
    %c0_i32 = arith.constant 0 : i32
    %c0_i32_0 = arith.constant 0 : i32
    %c0_i32_1 = arith.constant 0 : i32
    return %c0_i32, %c0_i32_0 : i32, i32
  }
  func.func @transform_5(%arg0: i32, %arg1: i32) -> (i32, i32, i32) {
    %c0_i32 = arith.constant 0 : i32
    %c0_i32_0 = arith.constant 0 : i32
    return %arg0, %arg1, %c0_i32 : i32, i32, i32
  }
}

</mosaic_0001>

<bundles_post_ra>
// kernel: tpu_custom_call.1
= control target key start
LH: loop header
LB: loop body
LE: loop exit
PB: predicated region body
PF: predicated region fallthrough
CT: control target
= control target key end

     0   :  { %10 = vsyncpa [#allocation3], 0  ;;  %s3903_s0 = inlined_call_operand.vmem [shape: bf16[2,2,10,18,4], index: 0, kind: input, shape index: {}]   ;;  %s3904_s1 = inlined_call_operand.vmem [shape: bf16[9,4,32], index: 1, kind: input, shape index: {}]   ;;  %s3905_s2 = inlined_call_operand.vmem [shape: f32[1,32], index: 2, kind: input, shape index: {}]   ;;  %s3906_s3 = inlined_call_operand.vmem [shape: bf16[32,128], index: 3, kind: input, shape index: {}]   ;;  %s3907_s4 = inlined_call_operand.vmem [shape: f32[1,128], index: 4, kind: input, shape index: {}]   ;;  %s3908_s5 = inlined_call_operand.hbm [shape: f32[2,256,128], index: 5, kind: output, shape index: {}]  }
   0x1   :  { %12 = vsyncpa [#allocation3 + $0x1], 0  ;;  %s3037_s18 = smov 0   ;;  %s3039_s19 = smov 0  }
   0x2   :  { %s3041_s20 = smov 0   ;;  %s3043_s21 = smov 0  }
   0x3   :  { %s3045_s22 = smov 0   ;;  %s3047_s23 = smov 0  }
   0x4   :  { %s3049_s24 = smov 0   ;;  %s3051_s25 = smov 0  }
   0x5 LB: > { %s2234_s26 = sadd.s32 4294967295, %s3002_s25   ;;  %s2235_s27 = sadd.s32 4294967294, %s3002_s25   ;;  %s3002_s25 = sphi %s3051_s25, %s18_s25   ;;  %s2998_s24 = sphi %s3049_s24, %s3923_s24   ;;  %s2994_s23 = sphi %s3047_s23, %s3922_s23   ;;  %s2990_s22 = sphi %s3045_s22, %s3921_s22   ;;  %s2986_s21 = sphi %s3043_s21, %s3920_s21   ;;  %s2982_s20 = sphi %s3041_s20, %s3919_s20   ;;  %s2978_s19 = sphi %s3039_s19, %s3918_s19   ;;  %s2974_s18 = sphi %s3037_s18, %s3917_s18  }
   0x6   : > { %s27_s28 = sadd.s32 1, %s2994_s23  ;;  %s30_s29 = sadd.s32 1, %s2998_s24 }
   0x7   : > { %p28_p0 = scmp.ge.s32.totalorder %s27_s28, 2  ;;  %p161_p1 = scmp.ne.s32.totalorder %s2982_s20, %s2978_s19 }
   0x8   : > { %p162_p2 = scmp.eq.s32.totalorder %s2234_s26, 3  ;;  %p167_p5 = scmp.ne.s32.totalorder %s2978_s19, %s2974_s18 }
   0x9   : > { %s3925_s28 = smov (%p28_p0, %s27_s28), 0  ;;  %s3927_s29 = smov (!%p28_p0, %s30_s29), %s2998_s24 }
   0xa   : > { %s147_s30 = ssub.s32 %s2994_s23, %s3925_s28  ;;  %p3088_p3 = por %p162_p2, %p161_p1 }
   0xb   : > { %p32_p4 = scmp.ge.s32.totalorder %s3927_s29, 2  ;;  %p168_p6 = scmp.eq.s32.totalorder %s2235_s27, 3 }
   0xc   : > { %p2238_p7 = scmp.ge.s32.totalorder %s3002_s25, 1  ;;  %p210_p9 = scmp.lt.s32.totalorder %s3002_s25, 5 }
   0xd   : > { %s3929_s29 = smov (%p32_p4, %s3927_s29), 0  ;;  %p3097_p8 = por %p168_p6, %p167_p5 }
   0xe   : > { %s146_s8 = ssub.s32 %s2998_s24, %s3929_s29  ;;  %s151_s9 = sadd.s32 1, %s2982_s20 }
   0xf   : > { %s148_s10 = sor.u32 %s147_s30, %s146_s8  ;;  %p211_p10 = pnand %p2238_p7, %p210_p9 }
  0x10   : > { %p149_p11 = scmp.eq.s32.totalorder %s148_s10, 0  ;;  %v2241_v0 = vld [vmem:[%s3904_s1 + $0x6] sm:$0x3] (!%p211_p10)  ;;  %vm351_vm0 = vcmask (!%p211_p10), 1041408   ;;  %p242_p12 = scmp.lt.s32.totalorder (!%p211_p10), %s2990_s22, 1  ;;  %vm1351_vm1 = vcmask (!%p211_p10), 1042432  }
  0x11   : > { %214 = sbr.rel (%p211_p10) target bundleno = 679 (0x2a7), region = 40  ;;  %p244_p13 = scmp.lt.s32.totalorder (!%p211_p10), %s2986_s21, 1  ;;  %2780 = vmatprep.subr.msk.bf16.mxu1 (!%p211_p10), %vm351_vm0, %v2241_v0  ;;  %v353_v1 = vsel (!%p211_p10), %vm351_vm0, %v2241_v0, 0  ;;  %v2294_v2 = vld [vmem:[%s3904_s1 + $0x8] sm:$0x3] (!%p211_p10)  ;;  %vm1352_vm2 = vcmask (!%p211_p10), 1046532  }
  0x12   : > { %s3106_s11 = scalar_select %p149_p11, %s2982_s20, %s151_s9  }
  0x13   : > { %2471 = vmatpush3.bf16.msra.mxu1 (!%p211_p10), %v353_v1  ;;  %2784 = vmatprep.subr.msk.bf16.mxu0 (!%p211_p10), %vm351_vm0, %v2294_v2  ;;  %v1080_v3 = vsel (!%p211_p10), %vm351_vm0, %v2294_v2, 0  ;;  %v2304_v4 = vld [vmem:[%s3904_s1 + $0xe] sm:$0x3] (!%p211_p10)  ;;  %v283_v5 = vld [vmem:[%s3904_s1] sm:$0x3] (!%p211_p10)  ;;  %vm326_vm4 = vcmask (!%p211_p10), 31744   ;;  %vm3149_vm6 = vmor (!%p211_p10), %vm1351_vm1, %vm1352_vm2 }
  0x14   : > { %2543 = vmatpush3.bf16.msra.mxu0 (!%p211_p10), %v1080_v3  ;;  %2781 = vmatprep.subr.msk.bf16.mxu1 (!%p211_p10), %vm351_vm0, %v283_v5  ;;  %vm686_vm3 = vsmask.f32 (!%p211_p10), 3328  ;;  %vm687_vm5 = vsmask.f32 (!%p211_p10), 7440  ;;  %v3136_v6 = vsel (!%p211_p10), %vm351_vm0, %v2304_v4, 0  ;;  %v461_v16 = vsel (!%p211_p10), %vm351_vm0, %v283_v5, 0 }
  0x15   : > { %2785 = vmatprep.subr.msk.bf16.mxu0 (!%p211_p10), %vm351_vm0, %v2304_v4  ;;  %v2267_v7 = vld [vmem:[%s3904_s1 + $0xc] sm:$0x3] (!%p211_p10)  ;;  %vm3213_vm7 = vmor (!%p211_p10), %vm686_vm3, %vm687_vm5  ;;  %v2351_v14 = vld [vmem:[%s3904_s1 + $0x10] sm:$0x3] (!%p211_p10)  ;;  %vm1910_vm8 = vcmask (!%p211_p10), 261120   ;;  %s2374_s14 = sshll.u32 (!%p211_p10), %s2986_s21, 4 }
  0x16   : > { %v3173_v26 = vsel (!%p211_p10), %vm351_vm0, %v2267_v7, 0  ;;  %s2375_s15 = sshll.u32 (!%p211_p10), %s2990_s22, 5 }
  0x18   : > { %s243_s16 = scalar_select %p242_p12, %s2990_s22, 1 }
  0x19   : > { %s245_s17 = scalar_select %p244_p13, %s2986_s21, 1 }
  0x1a   : > { %s2790_s9 = smul.u32 60, %s243_s16  ;;  %s2146_s21 = sadd.s32 %s2375_s15, %s2374_s14 }
  0x1b   : > { %s2789_s10 = smul.u32 30, %s245_s17  ;;  %s2376_s22 = sshll.u32 %s2146_s21, 7 }
  0x1c   : > { %s3837_s27 = scalar_lea.hbm %s3908_s5, %s2376_s22 }
  0x1d   : > { %s248_s12 = sadd.s32 %s2790_s9, %s2789_s10  ;;  %s239_s10 = sand.u32 1, %s2978_s19  }
  0x1e   : > { %s2240_s13 = sshll.u32 %s248_s12, 2  ;;  %s2239_s12 = sshll.u32 %s239_s10, 7 }
  0x1f   : > { %s3133_s26 = scalar_lea.vmem %s3903_s0, %s2240_s13  ;;  %s3762_s13 = scalar_lea.vmem [#allocation2], %s2239_s12 }
  0x20   : > { %v256_v8 = vld [vmem:[%s3133_s26 + $0xc] sm:$0xf]  ;;  %v257_v9 = vld [vmem:[%s3133_s26 + $0x10] sm:$0xf]  ;;  %v3144_v10 = vld [vmem:[%s3133_s26 + $0x18] sm:$0xf] }
  0x21   : > { %v3146_v11 = vcombine.low %v256_v8, %v257_v9  ;;  %v714_v12 = vshrl.u32 %v256_v8, 16  ;;  %v717_v13 = vshll.u32 %v256_v8, 16  ;;  %v3154_v15 = vld [vmem:[%s3133_s26 + $0x1c] sm:$0xf]  ;;  %v727_v17 = vshrl.u32 %v257_v9, 16  ;;  %s3851_s30 = scalar_lea.sflag [#allocation3], %s239_s10 }
  0x22   : > { %v2315_v18 = vrot.slane %v256_v8, 9  ;;  %v1363_v19 = vrot.slane %v257_v9, 5  ;;  %v3159_v20 = vcombine.low %v3144_v10, %v3154_v15  ;;  %v3162_v21 = vld [vmem:[%s3133_s26 + $0x24] sm:$0xf]  ;;  %v738_v22 = vshrl.u32 %v3144_v10, 16  ;;  %s3004_s9 = smov [#allocation2]  }
  0x23   : > { %2472 = vmatprep.mubr.msk.bf16.mxu1 %vm326_vm4, %v3146_v11  ;;  %v741_v23 = vshll.u32 %v3144_v10, 16  ;;  %v751_v24 = vshrl.u32 %v3154_v15, 16  ;;  %v3170_v25 = vld [vmem:[%s3133_s26 + $0x28] sm:$0xf]  ;;  %v762_v29 = vshrl.u32 %v3162_v21, 16  ;;  %v765_v30 = vshll.u32 %v3162_v21, 16 }
  0x24   : > { %v1364_v27 = vsel %vm3149_vm6, %v2315_v18, %v1363_v19  ;;  %2473 = vmatmul.mubr.msk.bf16.vlgmr.msra.gmra.mrb[0].mxu1 %vm326_vm4, %v3159_v20  ;;  %v3181_v28 = vcombine.low %v3162_v21, %v3170_v25  ;;  %v3186_v31 = vld [vmem:[%s3133_s26 + $0x30] sm:$0xf]  ;;  %v3189_v32 = vld [vmem:[%s3133_s26 + $0x34] sm:$0xf]  ;;  %v1365_v33 = vrot.slane %v1363_v19, 4  ;;  %v775_v34 = vshrl.u32 %v3170_v25, 16 }
  0x25   : > { %v3194_v35 = vcombine.low %v3186_v31, %v3189_v32  ;;  %v786_v36 = vshrl.u32 %v3186_v31, 16  ;;  %v258_v37 = vld [vmem:[%s3133_s26 + $0x14] sm:$0x1]  ;;  %2489 = vmatpush3.bf16.msra.mxu1 %v461_v16  ;;  %v716_v38 = vrot.slane %v714_v12, 4  ;;  %v719_v39 = vrot.slane %v717_v13, 5  ;;  %s2912_s12 = sshll.u32 %s3004_s9, 4  ;;  %s2913_s12 = int_to_ptr.vmem [resolvable:$false] %s2912_s12 }
  0x26   : > { %2476 = vmatprep.mubr.msk.bf16.mxu1 %vm326_vm4, %v3181_v28  ;;  %v723_v40 = vshll.u32 %v257_v9, 16  ;;  %v729_v41 = vrot.slane %v727_v17, 4  ;;  %v3201_v42 = vld [vmem:[%s3133_s26 + $0x20] sm:$0x1]  ;;  %2782 = vmatprep.subr.msk.bf16.mxu1 %vm351_vm0, %v2267_v7  ;;  %v733_v43 = vshll.u32 %v258_v37, 16  ;;  %v1366_v44 = vrot.slane %v258_v37, 5 }
  0x27   : > { %v740_v45 = vrot.slane %v738_v22, 4  ;;  %v743_v46 = vrot.slane %v741_v23, 5  ;;  %v3205_v47 = vld [vmem:[%s3133_s26 + $0x3c] sm:$0xf]  ;;  %v720_v48 = vor.u32 %v719_v39, %v716_v38  ;;  %v747_v50 = vshll.u32 %v3154_v15, 16  ;;  %s2914_s14 = scalar_lea.vmem %s2913_s12, 4096 }
  0x28   : > { %v725_v49 = vrot.slane %v723_v40, 5  ;;  %v753_v51 = vrot.slane %v751_v24, 4  ;;  %v3209_v52 = vld [vmem:[%s3133_s26 + $0x40] sm:$0xf]  ;;  %v735_v54 = vrot.slane %v733_v43, 5  ;;  %v1367_v55 = vsel %vm3149_vm6, %v1365_v33, %v1366_v44 }
  0x29   : > { %v744_v56 = vor.u32 %v743_v46, %v740_v45  ;;  %v757_v57 = vshll.u32 %v3201_v42, 16  ;;  %v721_v58 = vrot.slane %v720_v48, 4  ;;  %v3220_v60 = vcombine.low %v1364_v27, %v1367_v55  ;;  %v3228_v1 = vld [vmem:[%s3133_s26 + $0x48] sm:$0xf]  ;;  %v3231_v2 = vld [vmem:[%s3133_s26 + $0x4c] sm:$0xf] }
  0x2a   : > { %v730_v59 = vor.u32 %v729_v41, %v725_v49  ;;  %v749_v61 = vrot.slane %v747_v50, 5  ;;  %v789_v62 = vshll.u32 %v3186_v31, 16  ;;  %v3225_v0 = vcombine.low %v3205_v47, %v3209_v52  ;;  %v3245_v16 = vld [vmem:[%s3133_s26 + $0x2c] sm:$0x1]  ;;  %v3255_v23 = vld [vmem:[%s3133_s26 + $0x38] sm:$0x1] }
  0x2b   : > { %v745_v63 = vrot.slane %v744_v56, 4  ;;  %v726_v3 = vsel %vm3213_vm7, %v721_v58, %v725_v49  ;;  %v759_v7 = vrot.slane %v757_v57, 5  ;;  %v799_v8 = vshrl.u32 %v3189_v32, 16  ;;  %v3261_v38 = vld [vmem:[%s3133_s26 + $0x54] sm:$0xf] }
  0x2c   : > { %2477 = vmatmul.mubr.msk.bf16.gmra.mrb[4].mxu1 %vm326_vm4, %v3194_v35  ;;  %v731_v4 = vrot.slane %v730_v59, 4  ;;  %v754_v5 = vor.u32 %v753_v51, %v749_v61  ;;  %v810_v12 = vshrl.u32 %v3205_v47, 16  ;;  %v813_v13 = vshll.u32 %v3205_v47, 16  ;;  %v3267_v44 = vld [vmem:[%s3133_s26 + $0x58] sm:$0xf] }
  0x2d   : > { %v750_v9 = vsel %vm3213_vm7, %v745_v63, %v749_v61  ;;  %2480 = vmatprep.mubr.msk.bf16.mxu1 %vm326_vm4, %v3225_v0  ;;  %v823_v19 = vshrl.u32 %v3209_v52, 16  ;;  %v3252_v22 = vcombine.low %v3228_v1, %v3231_v2  ;;  %v764_v27 = vrot.slane %v762_v29, 4  ;;  %v3287_v57 = vld [vmem:[%s3133_s26 + $0x60] sm:$0xf]  ;;  %v3296_v63 = vld [vmem:[%s3133_s26 + $0x64] sm:$0xf] }
  0x2e   : > { %v736_v17 = vsel %vm3213_vm7, %v731_v4, %v735_v54  ;;  %v755_v18 = vrot.slane %v754_v5, 4  ;;  %v767_v33 = vrot.slane %v765_v30, 5  ;;  %v771_v37 = vshll.u32 %v3170_v25, 16 }
  0x2f   : > { %v3257_v24 = vcombine.low %v726_v3, %v736_v17  ;;  %v777_v40 = vrot.slane %v775_v34, 4  ;;  %v781_v41 = vshll.u32 %v3245_v16, 16  ;;  %v788_v43 = vrot.slane %v786_v36, 4  ;;  %v3278_v36 = vld [vmem:[%s3904_s1 + $0x4] sm:$0x3] }
  0x30   : > { %v760_v39 = vsel %vm3213_vm7, %v755_v18, %v759_v7  ;;  %v768_v29 = vor.u32 %v767_v33, %v764_v27  ;;  %v773_v30 = vrot.slane %v771_v37, 5  ;;  %v791_v46 = vrot.slane %v789_v62, 5  ;;  %v3308_v18 = vld [vmem:[%s3133_s26 + $0x44] sm:$0x1] }
  0x31   : > { %2544 = vmatprep.mubr.msk.bf16.mxu0 %vm326_vm4, %v3257_v24  ;;  %v3271_v45 = vcombine.low %v750_v9, %v760_v39  ;;  %v783_v48 = vrot.slane %v781_v41, 5  ;;  %v795_v49 = vshll.u32 %v3189_v32, 16  ;;  %v801_v50 = vrot.slane %v799_v8, 4 }
  0x32   : > { %v805_v34 = vshll.u32 %v3255_v23, 16  ;;  %v769_v51 = vrot.slane %v768_v29, 4  ;;  %v778_v54 = vor.u32 %v777_v40, %v773_v30  ;;  %v792_v55 = vor.u32 %v791_v46, %v788_v43 }
  0x33   : > { %2545 = vmatmul.mubr.msk.bf16.vlgmr.msra.gmra.mrb[0].mxu0 %vm326_vm4, %v3271_v45  ;;  %v3284_v56 = vcombine.low %v3261_v38, %v3267_v44  ;;  %v834_v58 = vshrl.u32 %v3228_v1, 16  ;;  %v837_v59 = vshll.u32 %v3228_v1, 16  ;;  %v847_v61 = vshrl.u32 %v3231_v2, 16 }
  0x34   : > { %2561 = vmatpush3.bf16.msra.mxu0 %v3136_v6  ;;  %2481 = vmatmul.mubr.msk.bf16.gmra.mrb[8].mxu1 %vm326_vm4, %v3252_v22  ;;  %v797_v62 = vrot.slane %v795_v49, 5  ;;  %v774_v3 = vsel %vm3213_vm7, %v769_v51, %v773_v30  ;;  %v779_v4 = vrot.slane %v778_v54, 4  ;;  %v793_v5 = vrot.slane %v792_v55, 4  ;;  %v3334_v55 = vld [vmem:[%s3133_s26 + $0x4] sm:$0xf] }
  0x35   : > { %v807_v7 = vrot.slane %v805_v34, 5  ;;  %2484 = vmatprep.mubr.msk.bf16.mxu1 %vm326_vm4, %v3284_v56  ;;  %2786 = vmatprep.subr.msk.bf16.mxu0 %vm351_vm0, %v3278_v36  ;;  %v858_v8 = vshrl.u32 %v3261_v38, 16  ;;  %v861_v9 = vshll.u32 %v3261_v38, 16  ;;  %v871_v17 = vshrl.u32 %v3267_v44, 16 }
  0x36   : > { %v802_v6 = vor.u32 %v801_v50, %v797_v62  ;;  %v784_v27 = vsel %vm3213_vm7, %v779_v4, %v783_v48  ;;  %v798_v33 = vsel %vm3213_vm7, %v793_v5, %v797_v62  ;;  %v3316_v37 = vcombine.low %v3287_v57, %v3296_v63  ;;  %v3323_v48 = vld [vmem:[%s3133_s26 + $0x50] sm:$0x1] }
  0x37   : > { %v812_v39 = vrot.slane %v810_v12, 4  ;;  %v3318_v40 = vcombine.low %v774_v3, %v784_v27  ;;  %v815_v43 = vrot.slane %v813_v13, 5  ;;  %v819_v29 = vshll.u32 %v3209_v52, 16  ;;  %v3331_v13 = vld [vmem:[%s3133_s26] sm:$0xf] }
  0x38   : > { %v803_v41 = vrot.slane %v802_v6, 4  ;;  %v825_v30 = vrot.slane %v823_v19, 4  ;;  %v829_v46 = vshll.u32 %v3308_v18, 16  ;;  %v836_v49 = vrot.slane %v834_v58, 4 }
  0x39   : > { %v839_v50 = vrot.slane %v837_v59, 5  ;;  %2548 = vmatprep.mubr.msk.bf16.mxu0 %vm326_vm4, %v3318_v40  ;;  %v816_v34 = vor.u32 %v815_v43, %v812_v39  ;;  %v821_v51 = vrot.slane %v819_v29, 5  ;;  %v843_v54 = vshll.u32 %v3231_v2, 16 }
  0x3a   : > { %v808_v12 = vsel %vm3213_vm7, %v803_v41, %v807_v7  ;;  %v831_v62 = vrot.slane %v829_v46, 5  ;;  %v849_v58 = vrot.slane %v847_v61, 4  ;;  %v853_v7 = vshll.u32 %v3323_v48, 16 }
  0x3b   : > { %v3336_v19 = vcombine.low %v798_v33, %v808_v12  ;;  %v840_v3 = vor.u32 %v839_v50, %v836_v49  ;;  %v817_v59 = vrot.slane %v816_v34, 4  ;;  %v826_v4 = vor.u32 %v825_v30, %v821_v51  ;;  %v3350_v30 = vld [vmem:[%s3133_s26 + $0x5c] sm:$0x1] }
  0x3c   : > { %2485 = vmatmul.mubr.msk.bf16.gmra.mrb[12].mxu1 %vm326_vm4, %v3316_v37  ;;  %v845_v5 = vrot.slane %v843_v54, 5  ;;  %v1048_v6 = vshrl.u32 %v3287_v57, 16  ;;  %v1051_v27 = vshll.u32 %v3287_v57, 16  ;;  %v2258_v39 = vcombine.low %v3331_v13, %v3334_v55 }
  0x3d   : > { %2549 = vmatmul.mubr.msk.bf16.gmra.mrb[4].mxu0 %vm326_vm4, %v3336_v19  ;;  %v841_v33 = vrot.slane %v840_v3, 4  ;;  %v822_v61 = vsel %vm3213_vm7, %v817_v59, %v821_v51  ;;  %v827_v41 = vrot.slane %v826_v4, 4  ;;  %v855_v29 = vrot.slane %v853_v7, 5  ;;  %v3363_v7 = vld [vmem:[%s3133_s26 + $0x68] sm:$0x1] }
  0x3e   : > { %v850_v43 = vor.u32 %v849_v58, %v845_v5  ;;  %v1061_v46 = vshrl.u32 %v3296_v63, 16  ;;  %2490 = vmatprep.mubr.msk.bf16.mxu1 %vm326_vm4, %v2258_v39  ;;  %v860_v50 = vrot.slane %v858_v8, 4  ;;  %v863_v12 = vrot.slane %v861_v9, 5 }
  0x3f   : > { %v846_v49 = vsel %vm3213_vm7, %v841_v33, %v845_v5  ;;  %v832_v34 = vsel %vm3213_vm7, %v827_v41, %v831_v62  ;;  %v867_v51 = vshll.u32 %v3267_v44, 16  ;;  %v873_v3 = vrot.slane %v871_v17, 4 }
  0x40   : > { %v851_v54 = vrot.slane %v850_v43, 4  ;;  %v3359_v58 = vcombine.low %v822_v61, %v832_v34  ;;  %v864_v59 = vor.u32 %v863_v12, %v860_v50  ;;  %v877_v4 = vshll.u32 %v3350_v30, 16  ;;  %v3381_v12 = vld [vmem:[%s3904_s1 + $0x2] sm:$0x3] }
  0x41   : > { %v1050_v5 = vrot.slane %v1048_v6, 4  ;;  %v869_v9 = vrot.slane %v867_v51, 5  ;;  %v1053_v33 = vrot.slane %v1051_v27, 5  ;;  %v1057_v62 = vshll.u32 %v3296_v63, 16  ;;  %v3376_v27 = vld [vmem:[%s3133_s26 + $0x6c] sm:$0xf] }
  0x42   : > { %v856_v8 = vsel %vm3213_vm7, %v851_v54, %v855_v29  ;;  %2552 = vmatprep.mubr.msk.bf16.mxu0 %vm326_vm4, %v3359_v58  ;;  %v865_v39 = vrot.slane %v864_v59, 4  ;;  %v879_v61 = vrot.slane %v877_v4, 5  ;;  %v1063_v41 = vrot.slane %v1061_v46, 4 }
  0x43   : > { %v3370_v17 = vcombine.low %v846_v49, %v856_v8  ;;  %v874_v43 = vor.u32 %v873_v3, %v869_v9  ;;  %v1054_v6 = vor.u32 %v1053_v33, %v1050_v5  ;;  %v1059_v50 = vrot.slane %v1057_v62, 5  ;;  %v3398_v5 = vld [vmem:[%s3133_s26 + $0x70] sm:$0xf] }
  0x44   : > { %2491 = vmatmul.mubr.msk.bf16.vlgmr.msra.gmra.mrb[0].mxu1 %vm326_vm4, %v3146_v11  ;;  %v1067_v29 = vshll.u32 %v3363_v7, 16  ;;  %v870_v46 = vsel %vm3213_vm7, %v865_v39, %v869_v9  ;;  %v1196_v51 = vshrl.u32 %v3376_v27, 16  ;;  %v1199_v8 = vshll.u32 %v3376_v27, 16 }
  0x45   : > { %2553 = vmatmul.mubr.msk.bf16.gmra.mrb[8].mxu0 %vm326_vm4, %v3370_v17  ;;  %2494 = vmatprep.mubr.msk.bf16.mxu1 %vm326_vm4, %v3159_v20  ;;  %v875_v11 = vrot.slane %v874_v43, 4  ;;  %v1055_v49 = vrot.slane %v1054_v6, 4  ;;  %v1064_v34 = vor.u32 %v1063_v41, %v1059_v50  ;;  %v1461_v33 = vsel %vm351_vm0, %v3278_v36, 0  ;;  %v3418_v43 = vld [vmem:[%s3133_s26 + $0x74] sm:$0x1] }
  0x46   : > { %v1069_v54 = vrot.slane %v1067_v29, 5  ;;  %2507 = vmatpush3.bf16.msra.mxu1 %v3173_v26  ;;  %v3411_v39 = vrot.slane %v1196_v51, 4  ;;  %v2316_v41 = vrot.slane %v3144_v10, 9  ;;  %v3420_v6 = vrot.slane %v1199_v8, 5 }
  0x47   : > { %2783 = vmatprep.subr.msk.bf16.mxu1 %vm351_vm0, %v3381_v12  ;;  %v880_v3 = vsel %vm3213_vm7, %v875_v11, %v879_v61  ;;  %v1060_v59 = vsel %vm3213_vm7, %v1055_v49, %v1059_v50  ;;  %v1065_v4 = vrot.slane %v1064_v34, 4  ;;  %v1205_v61 = vshll.u32 %v3398_v5, 16 }
  0x48   : > { %v3401_v9 = vcombine.low %v870_v46, %v880_v3  ;;  %v1209_v36 = vshrl.u32 %v3398_v5, 16  ;;  %v1370_v50 = vrot.slane %v3154_v15, 5  ;;  %v1373_v29 = vrot.slane %v3201_v42, 5 }
  0x49   : > { %v1070_v26 = vsel %vm3213_vm7, %v1065_v4, %v1069_v54  ;;  %v690_v46 = vshrl.u32 %v3331_v13, 16  ;;  %v693_v11 = vshll.u32 %v3331_v13, 16  ;;  %v2317_v10 = vrot.slane %v3162_v21, 9 }
  0x4a   : > { %2556 = vmatprep.mubr.msk.bf16.mxu0 %vm326_vm4, %v3401_v9  ;;  %v3409_v62 = vcombine.low %v1060_v59, %v1070_v26  ;;  %v1377_v49 = vrot.slane %v3170_v25, 5  ;;  %v703_v34 = vshrl.u32 %v3334_v55, 16  ;;  %v1371_v15 = vsel %vm3149_vm6, %v2316_v41, %v1370_v50 }
  0x4b   : > { %v1372_v42 = vrot.slane %v1370_v50, 4  ;;  %v1380_v54 = vrot.slane %v3245_v16, 5  ;;  %v3439_v51 = vrot.slane %v1205_v61, 5  ;;  %v1215_v3 = vshll.u32 %v3418_v43, 16 }
  0x4c   : > { %2495 = vmatmul.mubr.msk.bf16.gmra.mrb[4].mxu1 %vm326_vm4, %v3181_v28  ;;  %v1378_v21 = vsel %vm3149_vm6, %v2317_v10, %v1377_v49  ;;  %v1379_v59 = vrot.slane %v1377_v49, 4  ;;  %v1202_v25 = vor.u32 %v3420_v6, %v3411_v39  ;;  %v3446_v4 = vrot.slane %v1209_v36, 4 }
  0x4d   : > { %2557 = vmatmul.mubr.msk.bf16.gmra.mrb[12].mxu0 %vm326_vm4, %v3409_v62  ;;  %2498 = vmatprep.mubr.msk.bf16.mxu1 %vm326_vm4, %v3194_v35  ;;  %v1374_v8 = vsel %vm3149_vm6, %v1372_v42, %v1373_v29  ;;  %v2318_v26 = vrot.slane %v3186_v31, 9  ;;  %v1384_v41 = vrot.slane %v3189_v32, 5  ;;  %v1387_v50 = vrot.slane %v3255_v23, 5  ;;  %v3465_v31 = vld [vmem:[%s3904_s1 + $0xa] sm:$0x3] }
  0x4e   : > { %2562 = vmatprep.mubr.msk.bf16.mxu0 %vm326_vm4, %v3271_v45  ;;  %v3451_v16 = vcombine.low %v1371_v15, %v1374_v8  ;;  %v1381_v61 = vsel %vm3149_vm6, %v1379_v59, %v1380_v54  ;;  %v2319_v36 = vrot.slane %v3205_v47, 9  ;;  %v1391_v49 = vrot.slane %v3209_v52, 5  ;;  %v3472_v23 = vld [vmem:[%s3133_s26 + $0x8] sm:$0x1]  ;;  %s2149_s26 = sshll.u32 %s3762_s13, 4  ;;  %s3839_s26 = int_to_ptr.vmem [resolvable:$true] %s2149_s26 }
  0x4f   : > { %v3457_v10 = vcombine.low %v1378_v21, %v1381_v61  ;;  %v1394_v29 = vrot.slane %v3308_v18, 5  ;;  %v1385_v15 = vsel %vm3149_vm6, %v2318_v26, %v1384_v41  ;;  %v1386_v42 = vrot.slane %v1384_v41, 4  ;;  %s2908_s8 = scalar_lea.vmem %s3839_s26, 2048  ;;  %p2915_p4 = scmp.lt.s32.totalorder %s3839_s26, %s2913_s12 }
  0x50   : > { %v692_v32 = vrot.slane %v690_v46, 4  ;;  %v695_v54 = vrot.slane %v693_v11, 5  ;;  %v1392_v47 = vsel %vm3149_vm6, %v2319_v36, %v1391_v49  ;;  %v1393_v52 = vrot.slane %v1391_v49, 4  ;;  %p2909_p0 = scmp.ne.s32.totalorder %s3839_s26, %s2908_s8  ;;  %p2916_p5 = scmp.lt.s32.totalorder %s2914_s14, %s2908_s8 }
  0x51   : > { %v699_v18 = vshll.u32 %v3334_v55, 16  ;;  %v705_v21 = vrot.slane %v703_v34, 4  ;;  %v1388_v46 = vsel %vm3149_vm6, %v1386_v42, %v1387_v50  ;;  %v709_v59 = vshll.u32 %v3472_v23, 16 }
  0x52   : > { %v696_v11 = vor.u32 %v695_v54, %v692_v32  ;;  %v2320_v8 = vrot.slane %v3228_v1, 9  ;;  %v3487_v26 = vcombine.low %v1385_v15, %v1388_v46  ;;  %v1395_v34 = vsel %vm3149_vm6, %v1393_v52, %v1394_v29  ;;  %p2910_p1 = pnand %p2909_p0, %p3088_p3  ;;  %p2917_p6 = por %p2916_p5, %p2915_p4 }
  0x53   : > { %v701_v61 = vrot.slane %v699_v18, 5  ;;  %v1398_v41 = vrot.slane %v3231_v2, 5  ;;  %v3494_v50 = vcombine.low %v1392_v47, %v1395_v34  ;;  %v711_v49 = vrot.slane %v709_v59, 5 }
  0x54   : > { %2499 = vmatmul.mubr.msk.bf16.gmra.mrb[8].mxu1 %vm326_vm4, %v3225_v0  ;;  %v697_v36 = vrot.slane %v696_v11, 4  ;;  %v1401_v1 = vrot.slane %v3323_v48, 5  ;;  %v2321_v32 = vrot.slane %v3261_v38, 9  ;;  %v1405_v2 = vrot.slane %v3267_v44, 5  ;;  %p2911_p2 = pneg %p2910_p1 }
  0x55   : > { %2563 = vmatmul.mubr.msk.bf16.vlgmr.msra.gmra.mrb[0].mxu0 %vm326_vm4, %v3318_v40  ;;  %2502 = vmatprep.mubr.msk.bf16.mxu1 %vm326_vm4, %v3252_v22  ;;  %v1399_v15 = vsel %vm3149_vm6, %v2320_v8, %v1398_v41  ;;  %v1400_v42 = vrot.slane %v1398_v41, 4  ;;  %v1408_v54 = vrot.slane %v3350_v30, 5  ;;  %v2339_v47 = vrot.slane %v3287_v57, 9 }
  0x56   : > { %2579 = vmatpush3.bf16.msra.mxu0 %v1461_v33  ;;  %2566 = vmatprep.mubr.msk.bf16.mxu0 %vm326_vm4, %v3336_v19  ;;  %v706_v33 = vor.u32 %v705_v21, %v701_v61  ;;  %v702_v29 = vsel %vm3213_vm7, %v697_v36, %v701_v61  ;;  %v1579_v18 = vrot.slane %v3296_v63, 5  ;;  %v1582_v21 = vrot.slane %v3363_v7, 5  ;;  %p2918_p7 = pnand %p2917_p6, %p2911_p2 }
  0x57   : > { %2787 = vmatprep.subr.msk.bf16.mxu0 %vm351_vm0, %v3465_v31  ;;  %v1402_v48 = vsel %vm3149_vm6, %v1400_v42, %v1401_v1  ;;  %v1406_v38 = vsel %vm3149_vm6, %v2321_v32, %v1405_v2  ;;  %v1407_v11 = vrot.slane %v1405_v2, 4  ;;  %v2350_v44 = vrot.slane %v3376_v27, 9 }
  0x58   : > { %v707_v52 = vrot.slane %v706_v33, 4  ;;  %v3509_v46 = vcombine.low %v1399_v15, %v1402_v48  ;;  %v1580_v30 = vsel %vm3149_vm6, %v2339_v47, %v1579_v18  ;;  %v1581_v63 = vrot.slane %v1579_v18, 4 }
  0x59   : > { %v1711_v7 = vrot.slane %v3398_v5, 5  ;;  %v1212_v59 = vor.u32 %v3446_v4, %v3439_v51  ;;  %v1409_v34 = vsel %vm3149_vm6, %v1407_v11, %v1408_v54  ;;  %v1714_v61 = vrot.slane %v3418_v43, 5 }
  0x5a   : > { %v712_v57 = vsel %vm3213_vm7, %v707_v52, %v711_v49  ;;  %v3532_v41 = vcombine.low %v1406_v38, %v1409_v34  ;;  %v1583_v36 = vsel %vm3149_vm6, %v1581_v63, %v1582_v21  ;;  %v1356_v4 = vrot.slane %v3334_v55, 5 }
  0x5b   : > { %v2278_v8 = vcombine.low %v702_v29, %v712_v57  ;;  %v1713_v49 = vrot.slane %v1711_v7, 4  ;;  %v3541_v1 = vcombine.low %v1580_v30, %v1583_v36  ;;  %v1203_v42 = vrot.slane %v1202_v25, 4 }
  0x5c   : > { %2503 = vmatmul.mubr.msk.bf16.gmra.mrb[12].mxu1 %vm326_vm4, %v3284_v56  ;;  %v1213_v32 = vrot.slane %v1212_v59, 4  ;;  %v1217_v29 = vrot.slane %v1215_v3, 5  ;;  %v2314_v2 = vrot.slane %v3331_v13, 9  ;;  %v1358_v55 = vrot.slane %v1356_v4, 4 }
  0x5d   : > { %2567 = vmatmul.mubr.msk.bf16.gmra.mrb[4].mxu0 %vm326_vm4, %v3359_v58  ;;  %2508 = vmatprep.mubr.msk.bf16.mxu1 %vm326_vm4, %v3159_v20  ;;  %v3538_v20 = vsel %vm3149_vm6, %v2350_v44, %v1711_v7  ;;  %v3545_v33 = vsel %vm3149_vm6, %v1713_v49, %v1714_v61  ;;  %v1359_v54 = vrot.slane %v3472_v23, 5  ;;  %v932_v47 = vsel %vm351_vm0, %v3381_v12, 0 }
  0x5e   : > { %2570 = vmatprep.mubr.msk.bf16.mxu0 %vm326_vm4, %v3370_v17  ;;  %v2352_v15 = vcombine.low %v3538_v20, %v3545_v33  ;;  %v1208_v13 = vsel %vm3213_vm7, %v1203_v42, %v3439_v51  ;;  %v1218_v39 = vsel %vm3213_vm7, %v1213_v32, %v1217_v29  ;;  %v2268_v53 = vcombine.low %v3376_v27, %v3398_v5 }
  0x5f   : > { %v1360_v12 = vsel %vm3149_vm6, %v1358_v55, %v1359_v54  ;;  %v2305_v43 = vcombine.low %v1208_v13, %v1218_v39 }
  0x64   : > { %2509 = vmatmul.mubr.msk.bf16.vlgmr.msra.gmra.mrb[0].mxu1 %vm326_vm4, %v3181_v28  ;;  %v1357_v28 = vsel %vm3149_vm6, %v2314_v2, %v1356_v4 }
  0x65   : > { %2571 = vmatmul.mubr.msk.bf16.gmra.mrb[8].mxu0 %vm326_vm4, %v3401_v9  ;;  %2512 = vmatprep.mubr.msk.bf16.mxu1 %vm326_vm4, %v3194_v35  ;;  %v2323_v6 = vcombine.low %v1357_v28, %v1360_v12  ;;  %v1593_v35 = vsel %vm351_vm0, %v3465_v31, 0  ;;  %v3675_v31 = vld [vmem:[%s3905_s2] ss:$0 sm:$0xff] }
  0x66   : > { %2574 = vmatprep.mubr.msk.bf16.mxu0 %vm326_vm4, %v3409_v62  ;;  %2525 = vmatpush3.bf16.msra.mxu1 %v932_v47 }
  0x6c   : > { %2513 = vmatmul.mubr.msk.bf16.gmra.mrb[4].mxu1 %vm326_vm4, %v3225_v0  ;;  %v1725_v0 = vsel %vm351_vm0, %v2351_v14, 0 }
  0x6d   : > { %2575 = vmatmul.mubr.msk.bf16.gmra.mrb[12].mxu0 %vm326_vm4, %v2305_v43  ;;  %2516 = vmatprep.mubr.msk.bf16.mxu1 %vm326_vm4, %v3252_v22  ;;  %v2875_v22 = vld [vmem:[%s3906_s3 + $0x8] sm:$0xff]  }
  0x6e   : > { %2580 = vmatprep.mubr.msk.bf16.mxu0 %vm326_vm4, %v2323_v6 }
  0x74   : > { %2517 = vmatmul.mubr.msk.bf16.gmra.mrb[8].mxu1 %vm326_vm4, %v3284_v56 }
  0x75   : > { %2581 = vmatmul.mubr.msk.bf16.vlgmr.msra.gmra.mrb[0].mxu0 %vm326_vm4, %v3220_v60  ;;  %2520 = vmatprep.mubr.msk.bf16.mxu1 %vm326_vm4, %v3316_v37 }
  0x76   : > { %2597 = vmatpush3.bf16.msra.mxu0 %v1593_v35  ;;  %2584 = vmatprep.mubr.msk.bf16.mxu0 %vm326_vm4, %v3451_v16 }
  0x77   : > { %2788 = vmatprep.subr.msk.bf16.mxu0 %vm351_vm0, %v2351_v14 }
  0x7c   : > { %2521 = vmatmul.mubr.msk.bf16.gmra.mrb[12].mxu1 %vm326_vm4, %v2268_v53 }
  0x7d   : > { %2585 = vmatmul.mubr.msk.bf16.gmra.mrb[4].mxu0 %vm326_vm4, %v3457_v10  ;;  %2526 = vmatprep.mubr.msk.bf16.mxu1 %vm326_vm4, %v2278_v8 }
  0x7e   : > { %2588 = vmatprep.mubr.msk.bf16.mxu0 %vm326_vm4, %v3487_v26 }
  0x84   : > { %2527 = vmatmul.mubr.msk.bf16.vlgmr.msra.gmra.mrb[0].mxu1 %vm326_vm4, %v3257_v24 }
  0x85   : > { %2589 = vmatmul.mubr.msk.bf16.gmra.mrb[8].mxu0 %vm326_vm4, %v3494_v50  ;;  %2530 = vmatprep.mubr.msk.bf16.mxu1 %vm326_vm4, %v3271_v45 }
  0x86   : > { %2592 = vmatprep.mubr.msk.bf16.mxu0 %vm326_vm4, %v3509_v46 }
  0x8c   : > { %2531 = vmatmul.mubr.msk.bf16.gmra.mrb[4].mxu1 %vm326_vm4, %v3318_v40 }
  0x8d   : > { %2593 = vmatmul.mubr.msk.bf16.gmra.mrb[12].mxu0 %vm326_vm4, %v3532_v41  ;;  %2534 = vmatprep.mubr.msk.bf16.mxu1 %vm326_vm4, %v3336_v19 }
  0x8e   : > { %2598 = vmatprep.mubr.msk.bf16.mxu0 %vm326_vm4, %v3220_v60  ;;  %v2874_v60 = vld [vmem:[%s3906_s3] sm:$0xff]  }
  0x8f   : > { %2632 = vmatprep.subr.bf16.mxu1 %v2874_v60 }
  0x90   : > { %2633 = vmatpush3.bf16.msra.mxu1 %v2874_v60 }
  0x91   : > { %2634 = vmatprep.subr.bf16.mxu1 %v2875_v22 }
  0x94   : > { %2535 = vmatmul.mubr.msk.bf16.gmra.mrb[8].mxu1 %vm326_vm4, %v3359_v58 }
  0x95   : > { %2599 = vmatmul.mubr.msk.bf16.vlgmr.msra.gmra.mrb[0].mxu0 %vm326_vm4, %v3451_v16  ;;  %2538 = vmatprep.mubr.msk.bf16.mxu1 %vm326_vm4, %v3370_v17 }
  0x96   : > { %2615 = vmatpush3.bf16.msra.mxu0 %v1725_v0  ;;  %2602 = vmatprep.mubr.msk.bf16.mxu0 %vm326_vm4, %v3457_v10 }
  0x97   : > { %2635 = vmatpush3.bf16.msra.mxu1 %v2875_v22 }
  0x9c   : > { %2539 = vmatmul.mubr.msk.bf16.gmra.mrb[12].mxu1 %vm326_vm4, %v3401_v9 }
  0x9d   : > { %2603 = vmatmul.mubr.msk.bf16.gmra.mrb[4].mxu0 %vm326_vm4, %v3487_v26 }
  0x9e   : > { %2606 = vmatprep.mubr.msk.bf16.mxu0 %vm326_vm4, %v3494_v50 }
  0xa5   : > { %2607 = vmatmul.mubr.msk.bf16.gmra.mrb[8].mxu0 %vm326_vm4, %v3509_v46 }
  0xa6   : > { %2610 = vmatprep.mubr.msk.bf16.mxu0 %vm326_vm4, %v3532_v41 }
  0xad   : > { %2611 = vmatmul.mubr.msk.bf16.gmra.mrb[12].mxu0 %vm326_vm4, %v3541_v1 }
  0xae   : > { %2616 = vmatprep.mubr.msk.bf16.mxu0 %vm326_vm4, %v3451_v16 }
  0xb5   : > { %2617 = vmatmul.mubr.msk.bf16.vlgmr.msra.gmra.mrb[0].mxu0 %vm326_vm4, %v3457_v10 }
  0xb6   : > { %2620 = vmatprep.mubr.msk.bf16.mxu0 %vm326_vm4, %v3487_v26 }
  0xbd   : > { %2621 = vmatmul.mubr.msk.bf16.gmra.mrb[4].mxu0 %vm326_vm4, %v3494_v50 }
  0xbe   : > { %2624 = vmatprep.mubr.msk.bf16.mxu0 %vm326_vm4, %v3509_v46 }
  0xc5   : > { %2625 = vmatmul.mubr.msk.bf16.gmra.mrb[8].mxu0 %vm326_vm4, %v3532_v41 }
  0xc6   : > { %2628 = vmatprep.mubr.msk.bf16.mxu0 %vm326_vm4, %v3541_v1 }
  0xcd   : > { %2629 = vmatmul.mubr.msk.bf16.gmra.mrb[12].mxu0 %vm326_vm4, %v2352_v15 }
 0x157   : > { %v2528_v24 = vpop.f32.mrb[0].mxu1 }
 0x158   : > { %v968_v45 = vpop.f32.mrb[1].mxu1 }
 0x159   : > { %v2529_v56 = vpop.f32.mrb[2].mxu1 }
 0x15a   : > { %v971_v37 = vpop.f32.mrb[3].mxu1 }
 0x15f   : > { %v2532_v40 = vpop.f32.mrb[4].mxu1 }
 0x160   : > { %v984_v19 = vpop.f32.mrb[5].mxu1 }
 0x161   : > { %v2533_v58 = vpop.f32.mrb[6].mxu1 }
 0x162   : > { %v987_v17 = vpop.f32.mrb[7].mxu1 }
 0x167   : > { %v2536_v27 = vpop.f32.mrb[8].mxu1 }
 0x168   : > { %v1000_v5 = vpop.f32.mrb[9].mxu1 }
 0x169   : > { %v2537_v9 = vpop.f32.mrb[10].mxu1 }
 0x16a   : > { %v1003_v62 = vpop.f32.mrb[11].mxu1 }
 0x16f   : > { %v3664_v51 = vpop.f32.mrb[12].mxu1 }
 0x170   : > { %v3666_v3 = vpop.f32.mrb[13].mxu1 }
 0x171   : > { %v3668_v25 = vpop.f32.mrb[14].mxu1 }
 0x172   : > { %v3670_v16 = vpop.f32.mrb[15].mxu1 }
 0x188   : > { %v2618_v10 = vpop.f32.mrb[0].mxu0 }
 0x189   : > { %v2652_v23 = vadd.f32 %v2618_v10, %v2528_v24  ;;  %v1761_v26 = vpop.f32.mrb[1].mxu0 }
 0x18a   : > { %v2653_v50 = vadd.f32 %v1761_v26, %v968_v45  ;;  %v2619_v52 = vpop.f32.mrb[2].mxu0 }
 0x18b   : > { %v1849_v48 = vadd.f32 %v2652_v23, %v3675_v31  ;;  %v2654_v18 = vadd.f32 %v2619_v52, %v2529_v56  ;;  %v1764_v21 = vpop.f32.mrb[3].mxu0 }
 0x18c   : > { %v1847_v46 = vadd.f32 %v2653_v50, %v3675_v31  ;;  %v2655_v38 = vadd.f32 %v1764_v21, %v971_v37 }
 0x18d   : > { %v1850_v11 = vadd.f32 %v2654_v18, %v3675_v31  ;;  %v1865_v57 = vmax.f32 %v1849_v48, 0.0 }
 0x18e   : > { %v1848_v44 = vadd.f32 %v2655_v38, %v3675_v31  ;;  %v1863_v63 = vmax.f32 %v1847_v46, 0.0 }
 0x18f   : > { %v1866_v30 = vmax.f32 %v1850_v11, 0.0 }
 0x190   : > { %v1864_v7 = vmax.f32 %v1848_v44, 0.0  ;;  %v2622_v59 = vpop.f32.mrb[4].mxu0 }
 0x191   : > { %v1880_v8 = vpack.c.bf16 %v1866_v30, %v1865_v57  ;;  %v2656_v34 = vadd.f32 %v2622_v59, %v2532_v40  ;;  %v1777_v61 = vpop.f32.mrb[5].mxu0 }
 0x192   : > { %v1879_v41 = vpack.c.bf16 %v1864_v7, %v1863_v63  ;;  %v2657_v36 = vadd.f32 %v1777_v61, %v984_v19  ;;  %v2623_v20 = vpop.f32.mrb[6].mxu0 }
 0x193   : > { %v1853_v49 = vadd.f32 %v2656_v34, %v3675_v31  ;;  %v2658_v4 = vadd.f32 %v2623_v20, %v2533_v58  ;;  %v1780_v1 = vpop.f32.mrb[7].mxu0 }
 0x194   : > { %v1851_v33 = vadd.f32 %v2657_v36, %v3675_v31  ;;  %v2659_v15 = vadd.f32 %v1780_v1, %v987_v17  ;;  %2636 = vmatprep.mubr.msk.bf16.mxu1 %vm1910_vm8, %v1879_v41  ;;  %v2032_v41 = vlaneseq }
 0x195   : > { %v1854_v42 = vadd.f32 %v2658_v4, %v3675_v31  ;;  %2637 = vmatmul.mubr.msk.bf16.vlgmr.msra.gmra.mrb[16].mxu1 %vm1910_vm8, %v1880_v8  ;;  %v1869_v29 = vmax.f32 %v1853_v49, 0.0 }
 0x196   : > { %v1852_v32 = vadd.f32 %v2659_v15, %v3675_v31  ;;  %v1867_v55 = vmax.f32 %v1851_v33, 0.0  ;;  %v2033_v1 = vand.u32 127, %v2032_v41 }
 0x197   : > { %v1870_v2 = vmax.f32 %v1854_v42, 0.0 }
 0x198   : > { %v1868_v54 = vmax.f32 %v1852_v32, 0.0  ;;  %v2626_v47 = vpop.f32.mrb[8].mxu0  ;;  %vm2098_vm9 = vcmp.ge.s32.totalorder %v2033_v1, 18  ;;  %vm2099_vm10 = vcmp.lt.s32.totalorder %v2033_v1, 21 }
 0x199   : > { %v1882_v13 = vpack.c.bf16 %v1870_v2, %v1869_v29  ;;  %v2660_v39 = vadd.f32 %v2626_v47, %v2536_v27  ;;  %v1793_v28 = vpop.f32.mrb[9].mxu0  ;;  %vm3742_vm11 = vmand %vm2098_vm9, %vm2099_vm10 }
 0x19a   : > { %v1881_v12 = vpack.c.bf16 %v1868_v54, %v1867_v55  ;;  %v2661_v43 = vadd.f32 %v1793_v28, %v1000_v5  ;;  %v2627_v6 = vpop.f32.mrb[10].mxu0 }
 0x19b   : > { %v1857_v35 = vadd.f32 %v2660_v39, %v3675_v31  ;;  %v2662_v14 = vadd.f32 %v2627_v6, %v2537_v9  ;;  %v1796_v53 = vpop.f32.mrb[11].mxu0 }
 0x19c   : > { %v1855_v0 = vadd.f32 %v2661_v43, %v3675_v31  ;;  %v2663_v60 = vadd.f32 %v1796_v53, %v1003_v62  ;;  %2640 = vmatprep.mubr.msk.bf16.mxu1 %vm1910_vm8, %v1881_v12 }
 0x19d   : > { %v1858_v22 = vadd.f32 %v2662_v14, %v3675_v31  ;;  %2641 = vmatmul.mubr.msk.bf16.gmra.mrb[20].mxu1 %vm1910_vm8, %v1882_v13  ;;  %v1873_v45 = vmax.f32 %v1857_v35, 0.0 }
 0x19e   : > { %v1856_v24 = vadd.f32 %v2663_v60, %v3675_v31  ;;  %v1871_v37 = vmax.f32 %v1855_v0, 0.0 }
 0x19f   : > { %v1874_v56 = vmax.f32 %v1858_v22, 0.0 }
 0x1a0   : > { %v1872_v40 = vmax.f32 %v1856_v24, 0.0  ;;  %v2630_v19 = vpop.f32.mrb[12].mxu0 }
 0x1a1   : > { %v1884_v58 = vpack.c.bf16 %v1874_v56, %v1873_v45  ;;  %v2664_v17 = vadd.f32 %v2630_v19, %v3664_v51  ;;  %v1809_v27 = vpop.f32.mrb[13].mxu0 }
 0x1a2   : > { %v1883_v5 = vpack.c.bf16 %v1872_v40, %v1871_v37  ;;  %v2665_v9 = vadd.f32 %v1809_v27, %v3666_v3  ;;  %v2631_v62 = vpop.f32.mrb[14].mxu0 }
 0x1a3   : > { %v1861_v10 = vadd.f32 %v2664_v17, %v3675_v31  ;;  %v2666_v23 = vadd.f32 %v2631_v62, %v3668_v25  ;;  %v1812_v26 = vpop.f32.mrb[15].mxu0  ;;  %v3708_v25 = vld [vmem:[%s3907_s4] ss:$0 sm:$0xff] }
 0x1a4   : > { %v1859_v50 = vadd.f32 %v2665_v9, %v3675_v31  ;;  %v2667_v52 = vadd.f32 %v1812_v26, %v3670_v16  ;;  %2644 = vmatprep.mubr.msk.bf16.mxu1 %vm1910_vm8, %v1883_v5 }
 0x1a5   : > { %v1862_v48 = vadd.f32 %v2666_v23, %v3675_v31  ;;  %2645 = vmatmul.mubr.msk.bf16.gmra.mrb[24].mxu1 %vm1910_vm8, %v1884_v58  ;;  %v1877_v18 = vmax.f32 %v1861_v10, 0.0 }
 0x1a6   : > { %v1860_v51 = vadd.f32 %v2667_v52, %v3675_v31  ;;  %v1875_v21 = vmax.f32 %v1859_v50, 0.0 }
 0x1a7   : > { %v1878_v3 = vmax.f32 %v1862_v48, 0.0 }
 0x1a8   : > { %v1876_v46 = vmax.f32 %v1860_v51, 0.0 }
 0x1a9   : > { %v1886_v38 = vpack.c.bf16 %v1878_v3, %v1877_v18 }
 0x1aa   : > { %v1885_v11 = vpack.c.bf16 %v1876_v46, %v1875_v21 }
 0x1ac   : > { %2648 = vmatprep.mubr.msk.bf16.mxu1 %vm1910_vm8, %v1885_v11 }
 0x1ad   : > { %2649 = vmatmul.mubr.msk.bf16.gmra.mrb[28].mxu1 %vm1910_vm8, %v1886_v38 }
 0x268   : > { %v2638_v16 = vpop.f32.mrb[16].mxu1 }
 0x269   : > { %v1978_v44 = vadd.f32 %v2638_v16, %v3708_v25  ;;  %v1969_v57 = vpop.f32.mrb[17].mxu1 }
 0x26a   : > { %v3712_v31 = vadd.f32 %v3708_v25, %v1969_v57  ;;  %v2639_v30 = vpop.f32.mrb[18].mxu1 }
 0x26b   : > { %v2036_v63 = vmul.f32 0.5, %v1978_v44  ;;  %v3715_v7 = vadd.f32 %v2639_v30, %v3708_v25  ;;  %v1972_v59 = vpop.f32.mrb[19].mxu1 }
 0x26c   : > { %v2034_v8 = vmul.f32 0.5, %v3712_v31  ;;  %v3719_v34 = vadd.f32 %v3708_v25, %v1972_v59 }
 0x26d   : > { %2876 = vtanh.f32 %v2036_v63  ;;  %v2037_v61 = vmul.f32 0.5, %v3715_v7 }
 0x26e   : > { %2878 = vtanh.f32 %v2034_v8  ;;  %v2035_v36 = vmul.f32 0.5, %v3719_v34 }
 0x26f   : > { %2880 = vtanh.f32 %v2037_v61 }
 0x270   : > { %2882 = vtanh.f32 %v2035_v36  ;;  %v2642_v20 = vpop.f32.mrb[20].mxu1 }
 0x271   : > { %v3724_v49 = vadd.f32 %v2642_v20, %v3708_v25  ;;  %v1985_v4 = vpop.f32.mrb[21].mxu1 }
 0x272   : > { %v3727_v33 = vadd.f32 %v3708_v25, %v1985_v4  ;;  %v2643_v15 = vpop.f32.mrb[22].mxu1 }
 0x273   : > { %v2040_v42 = vmul.f32 0.5, %v3724_v49  ;;  %v3731_v32 = vadd.f32 %v2643_v15, %v3708_v25  ;;  %v1988_v29 = vpop.f32.mrb[23].mxu1 }
 0x274   : > { %v2038_v2 = vmul.f32 0.5, %v3727_v33  ;;  %v3736_v55 = vadd.f32 %v3708_v25, %v1988_v29 }
 0x275   : > { %2884 = vtanh.f32 %v2040_v42  ;;  %v2041_v54 = vmul.f32 0.5, %v3731_v32 }
 0x276   : > { %2886 = vtanh.f32 %v2038_v2  ;;  %v2039_v47 = vmul.f32 0.5, %v3736_v55 }
 0x277   : > { %v2877_v13 = vpop.eup %2876  ;;  %2888 = vtanh.f32 %v2041_v54 }
 0x278   : > { %v2879_v39 = vpop.eup %2878  ;;  %v2068_v28 = vadd.f32 1.0, %v2877_v13  ;;  %2890 = vtanh.f32 %v2039_v47  ;;  %v2646_v12 = vpop.f32.mrb[24].mxu1 }
 0x279   : > { %v2881_v43 = vpop.eup %2880  ;;  %v2066_v35 = vadd.f32 1.0, %v2879_v39  ;;  %v3747_v14 = vadd.f32 %v2646_v12, %v3708_v25  ;;  %v2001_v53 = vpop.f32.mrb[25].mxu1 }
 0x27a   : > { %v2883_v0 = vpop.eup %2882  ;;  %v2084_v60 = vmul.f32 0.5, %v2068_v28  ;;  %v2069_v22 = vadd.f32 1.0, %v2881_v43  ;;  %v3750_v24 = vadd.f32 %v3708_v25, %v2001_v53  ;;  %v2647_v45 = vpop.f32.mrb[26].mxu1 }
 0x27b   : > { %v2082_v56 = vmul.f32 0.5, %v2066_v35  ;;  %v2067_v37 = vadd.f32 1.0, %v2883_v0  ;;  %v2044_v40 = vmul.f32 0.5, %v3747_v14  ;;  %v3754_v19 = vadd.f32 %v2647_v45, %v3708_v25  ;;  %v2004_v58 = vpop.f32.mrb[27].mxu1 }
 0x27c   : > { %v2103_v17 = vsel %vm3742_vm11, %v2084_v60, %v1978_v44  ;;  %v2085_v27 = vmul.f32 0.5, %v2069_v22  ;;  %v2042_v5 = vmul.f32 0.5, %v3750_v24  ;;  %v3760_v9 = vadd.f32 %v3708_v25, %v2004_v58 }
 0x27d   : > { %2119 = vst [vmem:[%s3762_s13 + $0x10] sm:$0xff] %v2103_v17  ;;  %v2101_v62 = vsel %vm3742_vm11, %v2082_v56, %v3712_v31  ;;  %v2083_v10 = vmul.f32 0.5, %v2067_v37  ;;  %2892 = vtanh.f32 %v2044_v40  ;;  %v2045_v23 = vmul.f32 0.5, %v3754_v19 }
 0x27e   : > { %2117 = vst [vmem:[%s3762_s13] sm:$0xff] %v2101_v62  ;;  %v2104_v26 = vsel %vm3742_vm11, %v2085_v27, %v3715_v7  ;;  %2894 = vtanh.f32 %v2042_v5  ;;  %v2043_v50 = vmul.f32 0.5, %v3760_v9 }
 0x27f   : > { %v2885_v52 = vpop.eup %2884  ;;  %2120 = vst [vmem:[%s3762_s13 + $0x18] sm:$0xff] %v2104_v26  ;;  %v2102_v48 = vsel %vm3742_vm11, %v2083_v10, %v3719_v34  ;;  %2896 = vtanh.f32 %v2045_v23 }
 0x280   : > { %v2887_v51 = vpop.eup %2886  ;;  %2118 = vst [vmem:[%s3762_s13 + $0x8] sm:$0xff] %v2102_v48  ;;  %v2072_v18 = vadd.f32 1.0, %v2885_v52  ;;  %2898 = vtanh.f32 %v2043_v50  ;;  %v2650_v3 = vpop.f32.mrb[28].mxu1 }
 0x281   : > { %v2889_v21 = vpop.eup %2888  ;;  %v2070_v46 = vadd.f32 1.0, %v2887_v51  ;;  %v3780_v38 = vadd.f32 %v2650_v3, %v3708_v25  ;;  %v2017_v11 = vpop.f32.mrb[29].mxu1 }
 0x282   : > { %v2891_v16 = vpop.eup %2890  ;;  %v2088_v44 = vmul.f32 0.5, %v2072_v18  ;;  %v2073_v57 = vadd.f32 1.0, %v2889_v21  ;;  %v3783_v31 = vadd.f32 %v3708_v25, %v2017_v11  ;;  %v2651_v30 = vpop.f32.mrb[30].mxu1 }
 0x283   : > { %v2086_v63 = vmul.f32 0.5, %v2070_v46  ;;  %v2071_v7 = vadd.f32 1.0, %v2891_v16  ;;  %v2048_v59 = vmul.f32 0.5, %v3780_v38  ;;  %v3787_v8 = vadd.f32 %v2651_v30, %v3708_v25  ;;  %v2020_v34 = vpop.f32.mrb[31].mxu1 }
 0x284   : > { %v2107_v61 = vsel %vm3742_vm11, %v2088_v44, %v3724_v49  ;;  %v2089_v41 = vmul.f32 0.5, %v2073_v57  ;;  %v2046_v36 = vmul.f32 0.5, %v3783_v31  ;;  %v2021_v20 = vadd.f32 %v3708_v25, %v2020_v34 }
 0x285   : > { %2123 = vst [vmem:[%s3762_s13 + $0x30] sm:$0xff] %v2107_v61  ;;  %v2105_v4 = vsel %vm3742_vm11, %v2086_v63, %v3727_v33  ;;  %v2087_v1 = vmul.f32 0.5, %v2071_v7  ;;  %2900 = vtanh.f32 %v2048_v59  ;;  %v2049_v15 = vmul.f32 0.5, %v3787_v8 }
 0x286   : > { %2121 = vst [vmem:[%s3762_s13 + $0x20] sm:$0xff] %v2105_v4  ;;  %v2108_v49 = vsel %vm3742_vm11, %v2089_v41, %v3731_v32  ;;  %2902 = vtanh.f32 %v2046_v36  ;;  %v2047_v42 = vmul.f32 0.5, %v2021_v20 }
 0x287   : > { %v2893_v29 = vpop.eup %2892  ;;  %2124 = vst [vmem:[%s3762_s13 + $0x38] sm:$0xff] %v2108_v49  ;;  %v2106_v25 = vsel %vm3742_vm11, %v2087_v1, %v3736_v55  ;;  %2904 = vtanh.f32 %v2049_v15 }
 0x288   : > { %v2895_v33 = vpop.eup %2894  ;;  %2122 = vst [vmem:[%s3762_s13 + $0x28] sm:$0xff] %v2106_v25  ;;  %v2076_v2 = vadd.f32 1.0, %v2893_v29  ;;  %2906 = vtanh.f32 %v2047_v42 }
 0x289   : > { %v2897_v54 = vpop.eup %2896  ;;  %v2074_v47 = vadd.f32 1.0, %v2895_v33 }
 0x28a   : > { %v2899_v32 = vpop.eup %2898  ;;  %v2092_v13 = vmul.f32 0.5, %v2076_v2  ;;  %v2077_v39 = vadd.f32 1.0, %v2897_v54 }
 0x28b   : > { %v2090_v28 = vmul.f32 0.5, %v2074_v47  ;;  %v2075_v12 = vadd.f32 1.0, %v2899_v32 }
 0x28c   : > { %v2111_v55 = vsel %vm3742_vm11, %v2092_v13, %v3747_v14  ;;  %v2093_v43 = vmul.f32 0.5, %v2077_v39 }
 0x28d   : > { %2127 = vst [vmem:[%s3762_s13 + $0x50] sm:$0xff] %v2111_v55  ;;  %v2109_v35 = vsel %vm3742_vm11, %v2090_v28, %v3750_v24  ;;  %v2091_v53 = vmul.f32 0.5, %v2075_v12 }
 0x28e   : > { %2125 = vst [vmem:[%s3762_s13 + $0x40] sm:$0xff] %v2109_v35  ;;  %v2112_v0 = vsel %vm3742_vm11, %v2093_v43, %v3754_v19 }
 0x28f   : > { %v2901_v60 = vpop.eup %2900  ;;  %2128 = vst [vmem:[%s3762_s13 + $0x58] sm:$0xff] %v2112_v0  ;;  %v2110_v14 = vsel %vm3742_vm11, %v2091_v53, %v3760_v9 }
 0x290   : > { %v2903_v22 = vpop.eup %2902  ;;  %2126 = vst [vmem:[%s3762_s13 + $0x48] sm:$0xff] %v2110_v14  ;;  %v2080_v45 = vadd.f32 1.0, %v2901_v60 }
 0x291   : > { %v2905_v56 = vpop.eup %2904  ;;  %v2078_v24 = vadd.f32 1.0, %v2903_v22 }
 0x292   : > { %v2907_v37 = vpop.eup %2906  ;;  %v2096_v40 = vmul.f32 0.5, %v2080_v45  ;;  %v2081_v58 = vadd.f32 1.0, %v2905_v56 }
 0x293   : > { %v2094_v19 = vmul.f32 0.5, %v2078_v24  ;;  %v2079_v17 = vadd.f32 1.0, %v2907_v37 }
 0x294   : > { %v2115_v27 = vsel %vm3742_vm11, %v2096_v40, %v3780_v38  ;;  %v2097_v5 = vmul.f32 0.5, %v2081_v58 }
 0x295   : > { %2131 = vst [vmem:[%s3762_s13 + $0x70] sm:$0xff] %v2115_v27  ;;  %v2113_v9 = vsel %vm3742_vm11, %v2094_v19, %v3783_v31  ;;  %v2095_v62 = vmul.f32 0.5, %v2079_v17 }
 0x296   : > { %2129 = vst [vmem:[%s3762_s13 + $0x60] sm:$0xff] %v2113_v9  ;;  %v2116_v10 = vsel %vm3742_vm11, %v2097_v5, %v3787_v8 }
 0x297   : > { %2132 = vst [vmem:[%s3762_s13 + $0x78] sm:$0xff] %v2116_v10  ;;  %v2114_v23 = vsel %vm3742_vm11, %v2095_v62, %v2021_v20 }
 0x298   : > { %2130 = vst [vmem:[%s3762_s13 + $0x68] sm:$0xff] %v2114_v23 }
 0x299   : > { %2921 = shalt.err (!%p2918_p7)
}
 0x29a   : > { %s2922_s10 = scalar_lea.hbm %s3837_s27, 2048  ;;  %s2926_s21 = scalar_lea.hbm %s3908_s5, 8192 }
 0x29b   : > { %p2923_p9 = scmp.ne.s32.totalorder %s3837_s27, %s2922_s10  ;;  %p2927_p12 = scmp.lt.u32.totalorder %s3837_s27, %s3908_s5 }
 0x29c   : > { %p2928_p13 = scmp.lt.u32.totalorder %s2926_s21, %s2922_s10  ;;  %p2930_p1 = scmp.lt.u32.totalorder %s2922_s10, %s3837_s27 }
 0x29d   : > { %p2924_p10 = pnand %p2923_p9, %p3088_p3 }
 0x29e   : > { %p2929_p0 = por %p2928_p13, %p2927_p12 }
 0x29f   : > { %p2925_p11 = pneg %p2924_p10 }
 0x2a0   : > { %p2931_p2 = por %p2930_p1, %p2929_p0 }
 0x2a2   : > { %p2932_p4 = pnand %p2931_p2, %p2925_p11 }
 0x2a4   : > { %2935 = shalt.err (!%p2932_p4)
}
 0x2a5   : > { %s3005_s17 = smov 128   ;;  %s3006_s8 = smov 8  }
 0x2a6   : > { %2791 = dma.vmem_to_hbm [thread:$0]  (%p3088_p3), %s3839_s26, 2048, %s3837_s27, %s3851_s30, %s3005_s17, %s3005_s17, %s3006_s8  }
 0x2a7 PF: > { %p2797_p5 = scmp.ge.s32.totalorder %s3002_s25, 2  ;;  %s2164_s9 = sand.u32 1, %s2974_s18  }
 0x2a8   : > { %s2165_s12 = scalar_lea.sflag [#allocation3], %s2164_s9 }
 0x2a9   : > { %p2794_p6 = pnand %p2797_p5, %p3097_p8 }
 0x2ab   : > { %2969 = dma.done.wait (!%p2794_p6), %s2165_s12, 2048  }
 0x2ac   : > { %2971 = vsyncadd (!%p2794_p6), %s2165_s12, 4294965248  ;;  %s18_s25 = sadd.s32 1, %s3002_s25   ;;  %s3917_s18 = smov %s2978_s19 }
 0x2ad   : > { %p15_p7 = scmp.ge.s32.totalorder %s18_s25, 6   ;;  %s3918_s19 = smov %s2982_s20 }
 0x2ae   : > { %s3919_s20 = smov %s3106_s11  ;;  %s3920_s21 = smov %s2994_s23 }
 0x2af   : > { %s3921_s22 = smov %s2998_s24  ;;  %s3922_s23 = smov %s3925_s28 }
 0x2b0   : > { %s3923_s24 = smov %s3929_s29  ;;  %17 = sbr.rel (!%p15_p7) target bundleno = 5 (0x5), region = 83 }
 0x2b7   :  { %2170 = vsyncpa [#allocation3], 1 }
 0x2b8   :  { %2172 = vsyncpa [#allocation3 + $0x1], 1 }

</bundles_post_ra>
